<compile_context>
chip_gen: v6e
topology: v6e:2x2x1
jax: 0.10.0
libtpu: 0.0.40
codegen_flags: <defaults>
</compile_context>

<pallas_src>
import math
import numpy as np
import jax
import jax.numpy as jnp
from jax.experimental import pallas as pl
from jax.experimental.pallas import tpu as pltpu

# ----------------------------- configuration --------------------------------
N_IMGS = 2          # N : number of batched inputs
B_PROPS = 64        # B : proposals per image
INPUT_DIM = 4       # D : proposal-box dim
FEATURE_DIM = 8     # C : encoding dim
HIDDEN = 32         # hidden_size
POS_DIM = 8         # position_dim (even)
INPUT_PROJ_DIM = 16
FEATURE_PROJ_DIM = 16
NUM_BLOCK = 2
HALF_DIM = POS_DIM // 2
CAT_DIM = FEATURE_PROJ_DIM + INPUT_PROJ_DIM

MAX_TILE_M = 1024   # upper bound on rows (lanes) per grid step


def _round_up(v, k):
    return -(-v // k) * k


# --------------------- packed-weight layout (static) -------------------------
# Every weight is stored transposed (out, in) at an 8-aligned sublane offset,
# columns starting at 0; biases are (out, 1) columns.  One buffer, one DMA.
def _build_layout():
    entries = []

    def add(name, rows, cols):
        entries.append((name, rows, cols))

    add("fp_w1", 2 * FEATURE_PROJ_DIM, FEATURE_DIM)
    add("fp_b1", 2 * FEATURE_PROJ_DIM, 1)
    add("fp_w2", FEATURE_PROJ_DIM, 2 * FEATURE_PROJ_DIM)
    add("fp_b2", FEATURE_PROJ_DIM, 1)
    add("ip_w1", 2 * INPUT_PROJ_DIM, INPUT_DIM)
    add("ip_b1", 2 * INPUT_PROJ_DIM, 1)
    add("ip_w2", INPUT_PROJ_DIM, 2 * INPUT_PROJ_DIM)
    add("ip_b2", INPUT_PROJ_DIM, 1)
    for b in range(NUM_BLOCK):
        add(f"tp_w1x_{b}", 2 * INPUT_DIM, INPUT_DIM)     # x-part of cat(x, emb)
        add(f"tp_w1e_{b}", 2 * INPUT_DIM, POS_DIM)       # emb-part of cat(x, emb)
        add(f"tp_b1_{b}", 2 * INPUT_DIM, 1)
        add(f"tp_w2_{b}", INPUT_DIM, 2 * INPUT_DIM)
        add(f"tp_b2_{b}", INPUT_DIM, 1)
        add(f"ts_w1_{b}", 2 * HIDDEN, CAT_DIM)           # fused map_t|map_s layer-1
        add(f"ts_b1_{b}", 2 * HIDDEN, 1)
        add(f"mt_w2_{b}", HIDDEN, HIDDEN)
        add(f"mt_b2_{b}", HIDDEN, 1)
        add(f"mt_w3_{b}", INPUT_DIM, HIDDEN)
        add(f"mt_b3_{b}", INPUT_DIM, 1)
        add(f"ms_w2_{b}", HIDDEN, HIDDEN)
        add(f"ms_b2_{b}", HIDDEN, 1)
        add(f"ms_w3_{b}", INPUT_DIM, HIDDEN)
        add(f"ms_b3_{b}", INPUT_DIM, 1)

    layout, off = {}, 0
    for name, rows, cols in entries:
        layout[name] = (off, rows, cols)
        off += _round_up(rows, 8)
    return layout, _round_up(off, 8)


LAYOUT, PACK_ROWS = _build_layout()
PACK_COLS = CAT_DIM  # 32 == max fan-in of any layer


def pack_params(params):
    """Pack all (transposed) weights/biases into one (PACK_ROWS, PACK_COLS) f32 buffer."""
    buf = np.zeros((PACK_ROWS, PACK_COLS), np.float32)

    def put(name, arr):
        off, r, c = LAYOUT[name]
        a = np.asarray(arr, np.float32)
        assert a.shape == (r, c), (name, a.shape, (r, c))
        buf[off:off + r, :c] = a

    put("fp_w1", params["fp_w1"].T); put("fp_b1", params["fp_b1"].T)
    put("fp_w2", params["fp_w2"].T); put("fp_b2", params["fp_b2"].T)
    put("ip_w1", params["ip_w1"].T); put("ip_b1", params["ip_b1"].T)
    put("ip_w2", params["ip_w2"].T); put("ip_b2", params["ip_b2"].T)
    for b in range(NUM_BLOCK):
        put(f"tp_w1x_{b}", params["tp_w1"][b, :INPUT_DIM].T)
        put(f"tp_w1e_{b}", params["tp_w1"][b, INPUT_DIM:].T)
        put(f"tp_b1_{b}", params["tp_b1"][b].T)
        put(f"tp_w2_{b}", params["tp_w2"][b].T)
        put(f"tp_b2_{b}", params["tp_b2"][b].T)
        put(f"ts_w1_{b}", np.concatenate(
            [np.asarray(params["mt_w1"][b]).T, np.asarray(params["ms_w1"][b]).T], axis=0))
        put(f"ts_b1_{b}", np.concatenate(
            [np.asarray(params["mt_b1"][b]).T, np.asarray(params["ms_b1"][b]).T], axis=0))
        put(f"mt_w2_{b}", params["mt_w2"][b].T)
        put(f"mt_b2_{b}", params["mt_b2"][b].T)
        put(f"mt_w3_{b}", params["mt_w3"][b].T)
        put(f"mt_b3_{b}", params["mt_b3"][b].T)
        put(f"ms_w2_{b}", params["ms_w2"][b].T)
        put(f"ms_b2_{b}", params["ms_b2"][b].T)
        put(f"ms_w3_{b}", params["ms_w3"][b].T)
        put(f"ms_b3_{b}", params["ms_b3"][b].T)
    return jnp.asarray(buf)


# ------------------------------- kernel -------------------------------------
def residual_net_kernel(t_ref, f_ref, x_ref, w_ref, o_ref):
    tm = t_ref.shape[-1]  # rows-per-tile (lane axis), static

    def W(name):
        off, r, c = LAYOUT[name]
        return w_ref[off:off + r, 0:c]

    def mm(w, a):
        return jnp.dot(w, a, preferred_element_type=jnp.float32)

    def relu(v):
        return jnp.maximum(v, 0.0)

    x = x_ref[...]      # (D, tm)   features on sublanes, proposals on lanes
    feat = f_ref[...]   # (C, tm)
    t = t_ref[...]      # (1, tm)

    # Sinusoidal time embedding: rows 0..half-1 = sin, half..pos-1 = cos.
    # (Loop-invariant in the reference loop -> computed once.)
    scale = math.log(10000.0) / (HALF_DIM - 1)
    row = jax.lax.broadcasted_iota(jnp.int32, (POS_DIM, tm), 0)
    k = jnp.where(row < HALF_DIM, row, row - HALF_DIM).astype(jnp.float32)
    ang = jnp.exp(k * (-scale)) * t                                 # (POS_DIM, tm)
    emb = jnp.where(row < HALF_DIM, jnp.sin(ang), jnp.cos(ang))     # (POS_DIM, tm)

    # Shared feature projection (identical value every block -> hoisted).
    fh = relu(mm(W("fp_w1"), feat) + W("fp_b1"))
    f_proj = mm(W("fp_w2"), fh) + W("fp_b2")                        # (FPD, tm)

    for b in range(NUM_BLOCK):
        # ---- x = x + time_projections[b](cat(x, emb)) ----
        h = relu(mm(W(f"tp_w1x_{b}"), x) + mm(W(f"tp_w1e_{b}"), emb)
                 + W(f"tp_b1_{b}"))
        x = x + mm(W(f"tp_w2_{b}"), h) + W(f"tp_b2_{b}")

        # ---- shared input projection of the current x ----
        xh = relu(mm(W("ip_w1"), x) + W("ip_b1"))
        x_proj = mm(W("ip_w2"), xh) + W("ip_b2")                    # (IPD, tm)

        # F_x = cat(feature_proj(F), input_proj(x)) along the feature axis.
        fx = jnp.concatenate([f_proj, x_proj], axis=0)              # (CAT, tm)

        # ---- fused layer-1 of map_t | map_s (shared input, concat outputs) ----
        h1 = relu(mm(W(f"ts_w1_{b}"), fx) + W(f"ts_b1_{b}"))        # (2H, tm)
        ht = h1[:HIDDEN]
        hs = h1[HIDDEN:]

        # map_t tail: ReLU -> Linear ; then x = x - t_map   (use_difference=True)
        ht = relu(mm(W(f"mt_w2_{b}"), ht) + W(f"mt_b2_{b}"))
        x = x - (mm(W(f"mt_w3_{b}"), ht) + W(f"mt_b3_{b}"))

        # map_s tail + Hardtanh(-2, 2) ; then x *= exp(-s)  (include_scaling=True)
        hs = relu(mm(W(f"ms_w2_{b}"), hs) + W(f"ms_b2_{b}"))
        s = jnp.clip(mm(W(f"ms_w3_{b}"), hs) + W(f"ms_b3_{b}"), -2.0, 2.0)
        x = x * jnp.exp(-s)

    o_ref[...] = x


# ------------------------------- wrapper -------------------------------------
def residual_net_forward(wbuf, encoding, proposal_boxes, prior_t):
    """encoding: (N,B,C)  proposal_boxes: (N,B,D)  prior_t: (N,B) -> pred_boxes (N,B,D)."""
    n, bsz, _ = proposal_boxes.shape
    m = n * bsz

    # Lane-transposed layout: rows (proposals) on the lane axis.
    f_t = encoding.reshape(m, FEATURE_DIM).T.astype(jnp.float32)      # (C, M)
    x_t = proposal_boxes.reshape(m, INPUT_DIM).T.astype(jnp.float32)  # (D, M)
    t_t = prior_t.reshape(1, m).astype(jnp.float32)                   # (1, M)

    # Collapse the grid to a single step whenever the whole row range fits.
    # (On v7x one could use tile_m = m_pad // 2 to shard across the 2 TCs.)
    tile_m = min(_round_up(m, 128), MAX_TILE_M)
    m_pad = _round_up(m, tile_m)
    if m_pad != m:  # pad the row (lane) axis; tail is sliced off below
        pad = ((0, 0), (0, m_pad - m))
        f_t, x_t, t_t = jnp.pad(f_t, pad), jnp.pad(x_t, pad), jnp.pad(t_t, pad)
    grid = (m_pad // tile_m,)

    out = pl.pallas_call(
        residual_net_kernel,
        out_shape=jax.ShapeDtypeStruct((INPUT_DIM, m_pad), jnp.float32),
        grid_spec=pltpu.PrefetchScalarGridSpec(
            num_scalar_prefetch=0,
            grid=grid,
            in_specs=[
                pl.BlockSpec((1, tile_m), lambda i: (0, i)),
                pl.BlockSpec((FEATURE_DIM, tile_m), lambda i: (0, i)),
                pl.BlockSpec((INPUT_DIM, tile_m), lambda i: (0, i)),
                pl.BlockSpec((PACK_ROWS, PACK_COLS), lambda i: (0, 0)),  # weights resident
            ],
            out_specs=pl.BlockSpec((INPUT_DIM, tile_m), lambda i: (0, i)),
        ),
        compiler_params=pltpu.CompilerParams(
            dimension_semantics=("parallel",) * len(grid)),
    )(t_t, f_t, x_t, wbuf)

    return out[:, :m].T.reshape(n, bsz, INPUT_DIM)


# --------------------------- parameter init ----------------------------------
def _linear(key, fan_in, fan_out):
    kw, kb = jax.random.split(key)
    bound = 1.0 / math.sqrt(fan_in)
    w = jax.random.uniform(kw, (fan_in, fan_out), jnp.float32, -bound, bound)
    b = jax.random.uniform(kb, (1, fan_out), jnp.float32, -bound, bound)
    return w, b


def init_params(key):
    keys = jax.random.split(key, 12)
    p = {}
    p["fp_w1"], p["fp_b1"] = _linear(keys[0], FEATURE_DIM, 2 * FEATURE_PROJ_DIM)
    p["fp_w2"], p["fp_b2"] = _linear(keys[1], 2 * FEATURE_PROJ_DIM, FEATURE_PROJ_DIM)
    p["ip_w1"], p["ip_b1"] = _linear(keys[2], INPUT_DIM, 2 * INPUT_PROJ_DIM)
    p["ip_w2"], p["ip_b2"] = _linear(keys[3], 2 * INPUT_PROJ_DIM, INPUT_PROJ_DIM)

    def stacked(kbase, fan_in, fan_out):
        ws, bs = [], []
        for i in range(NUM_BLOCK):
            w, b = _linear(jax.random.fold_in(kbase, i), fan_in, fan_out)
            ws.append(w)
            bs.append(b)
        return jnp.stack(ws), jnp.stack(bs)

    p["tp_w1"], p["tp_b1"] = stacked(keys[4], INPUT_DIM + POS_DIM, 2 * INPUT_DIM)
    p["tp_w2"], p["tp_b2"] = stacked(keys[5], 2 * INPUT_DIM, INPUT_DIM)
    p["mt_w1"], p["mt_b1"] = stacked(keys[6], CAT_DIM, HIDDEN)
    p["mt_w2"], p["mt_b2"] = stacked(keys[7], HIDDEN, HIDDEN)
    p["mt_w3"], p["mt_b3"] = stacked(keys[8], HIDDEN, INPUT_DIM)
    p["ms_w1"], p["ms_b1"] = stacked(keys[9], CAT_DIM, HIDDEN)
    p["ms_w2"], p["ms_b2"] = stacked(keys[10], HIDDEN, HIDDEN)
    p["ms_w3"], p["ms_b3"] = stacked(keys[11], HIDDEN, INPUT_DIM)
    return p


# --------------------------- pure-JAX reference -------------------------------
def ref_forward(params, encoding, proposal_boxes, prior_t):
    x = proposal_boxes.astype(jnp.float32)
    F = encoding.astype(jnp.float32)
    t = prior_t.astype(jnp.float32)
    scale = math.log(10000.0) / (HALF_DIM - 1)
    freqs = jnp.exp(jnp.arange(HALF_DIM, dtype=jnp.float32) * -scale)

    def proj(z, w1, b1, w2, b2):
        return jnp.maximum(z @ w1 + b1[0], 0.0) @ w2 + b2[0]

    def mlp3(z, w1, b1, w2, b2, w3, b3):
        h = jnp.maximum(z @ w1 + b1[0], 0.0)
        h = jnp.maximum(h @ w2 + b2[0], 0.0)
        return h @ w3 + b3[0]

    for i in range(NUM_BLOCK):
        ang = t[..., None] * freqs[None, None, :]
        emb = jnp.concatenate([jnp.sin(ang), jnp.cos(ang)], axis=-1)
        x = x + proj(jnp.concatenate([x, emb], axis=-1),
                     params["tp_w1"][i], params["tp_b1"][i],
                     params["tp_w2"][i], params["tp_b2"][i])
        fp = proj(F, params["fp_w1"], params["fp_b1"], params["fp_w2"], params["fp_b2"])
        xp = proj(x, params["ip_w1"], params["ip_b1"], params["ip_w2"], params["ip_b2"])
        fx = jnp.concatenate([fp, xp], axis=-1)
        t_map = mlp3(fx, params["mt_w1"][i], params["mt_b1"][i],
                     params["mt_w2"][i], params["mt_b2"][i],
                     params["mt_w3"][i], params["mt_b3"][i])
        x = x - t_map
        s = jnp.clip(mlp3(fx, params["ms_w1"][i], params["ms_b1"][i],
                          params["ms_w2"][i], params["ms_b2"][i],
                          params["ms_w3"][i], params["ms_b3"][i]), -2.0, 2.0)
        x = x * jnp.exp(-s)
    return x


# --------------------------------- main ---------------------------------------
if __name__ == "__main__":
    key = jax.random.PRNGKey(0)
    k_par, k_f, k_x, k_t = jax.random.split(key, 4)

    params = init_params(k_par)
    wbuf = pack_params(params)

    # batched_inputs[i] = {'encoding': (B,C), 'proposal_boxes': (B,D), 'prior_t': (B,)}
    encoding = jax.random.normal(k_f, (N_IMGS, B_PROPS, FEATURE_DIM), jnp.float32)
    proposal_boxes = jax.random.normal(k_x, (N_IMGS, B_PROPS, INPUT_DIM), jnp.float32)
    prior_t = jax.random.uniform(k_t, (N_IMGS, B_PROPS), jnp.float32)

    # TODO(synk): the torch.isfinite(F).all() assert and the in-place mutation of
    # the batched_inputs dicts ('pred_boxes' writeback) are host-side Python; the
    # kernel returns pred_boxes directly.

    pred_boxes = jax.block_until_ready(
        residual_net_forward(wbuf, encoding, proposal_boxes, prior_t))

    expected = jax.block_until_ready(
        ref_forward(params, encoding, proposal_boxes, prior_t))

    np.testing.assert_allclose(np.asarray(pred_boxes), np.asarray(expected),
                               rtol=1e-4, atol=1e-4)
    print("KERNEL_OK")
</pallas_src>

<mosaic_0001>
module attributes {stable_mosaic.version = 11 : i64} {
  func.func @residual_net_kernel(%arg0: i32, %arg1: memref<1x128xf32, #tpu.memory_space<vmem>>, %arg2: memref<8x128xf32, #tpu.memory_space<vmem>>, %arg3: memref<4x128xf32, #tpu.memory_space<vmem>>, %arg4: memref<848x32xf32, #tpu.memory_space<vmem>>, %arg5: memref<4x128xf32, #tpu.memory_space<vmem>>) attributes {dimension_semantics = [#tpu.dimension_semantics<parallel>], iteration_bounds = array<i64: 1>, scalar_prefetch = 0 : i64, scratch_operands = 0 : i64, tpu.core_type = #tpu.core_type<tc>, window_params = [{transform_indices = @transform_0, window_bounds = array<i64: 1, 128>}, {transform_indices = @transform_1, window_bounds = array<i64: 8, 128>}, {transform_indices = @transform_2, window_bounds = array<i64: 4, 128>}, {pipeline_mode = #tpu.pipeline_mode<synchronous>, transform_indices = @transform_3, window_bounds = array<i64: 848, 32>}, {transform_indices = @transform_4, window_bounds = array<i64: 4, 128>}]} {
    %c0 = arith.constant 0 : index
    %c0_0 = arith.constant 0 : index
    %0 = vector.load %arg3[%c0, %c0_0] : memref<4x128xf32, #tpu.memory_space<vmem>>, vector<4x128xf32>
    %c0_1 = arith.constant 0 : index
    %c0_2 = arith.constant 0 : index
    %1 = vector.load %arg2[%c0_1, %c0_2] : memref<8x128xf32, #tpu.memory_space<vmem>>, vector<8x128xf32>
    %c0_3 = arith.constant 0 : index
    %c0_4 = arith.constant 0 : index
    %2 = vector.load %arg1[%c0_3, %c0_4] : memref<1x128xf32, #tpu.memory_space<vmem>>, vector<1x128xf32>
    %3 = tpu.iota {dimensions = array<i32: 0>} : vector<8x128xi32>
    %c4_i32 = arith.constant 4 : i32
    %4 = vector.broadcast %c4_i32 : i32 to vector<8x128xi32>
    %5 = arith.cmpi slt, %3, %4 : vector<8x128xi32>
    %c4_i32_5 = arith.constant 4 : i32
    %6 = vector.broadcast %c4_i32_5 : i32 to vector<8x128xi32>
    %7 = arith.subi %3, %6 : vector<8x128xi32>
    %8 = arith.select %5, %3, %7 : vector<8x128xi1>, vector<8x128xi32>
    %9 = arith.sitofp %8 : vector<8x128xi32> to vector<8x128xf32>
    %cst = arith.constant -3.07011342 : f32
    %10 = vector.broadcast %cst : f32 to vector<8x128xf32>
    %11 = arith.mulf %9, %10 : vector<8x128xf32>
    %12 = math.exp %11 : vector<8x128xf32>
    %13 = vector.broadcast %2 : vector<1x128xf32> to vector<8x128xf32>
    %14 = arith.mulf %12, %13 : vector<8x128xf32>
    %c4_i32_6 = arith.constant 4 : i32
    %15 = vector.broadcast %c4_i32_6 : i32 to vector<8x128xi32>
    %16 = arith.cmpi slt, %3, %15 : vector<8x128xi32>
    %17 = math.sin %14 : vector<8x128xf32>
    %18 = math.cos %14 : vector<8x128xf32>
    %19 = arith.select %16, %17, %18 : vector<8x128xi1>, vector<8x128xf32>
    %c0_7 = arith.constant 0 : index
    %c0_8 = arith.constant 0 : index
    %20 = vector.load %arg4[%c0_7, %c0_8] : memref<848x32xf32, #tpu.memory_space<vmem>>, vector<32x8xf32>
    %cst_9 = arith.constant dense<0.000000e+00> : vector<32x128xf32>
    %21 = tpu.matmul %20, %1, %cst_9 {dimension_numbers = #tpu.dot_dimension_numbers<[1], [0], [0], [1], [0, 0, 1, 1], [], []>} : vector<32x8xf32>, vector<8x128xf32>, vector<32x128xf32> -> vector<32x128xf32>
    %c32 = arith.constant 32 : index
    %c0_10 = arith.constant 0 : index
    %22 = vector.load %arg4[%c32, %c0_10] : memref<848x32xf32, #tpu.memory_space<vmem>>, vector<32x1xf32>
    %23 = vector.broadcast %22 : vector<32x1xf32> to vector<32x128xf32>
    %24 = arith.addf %21, %23 : vector<32x128xf32>
    %cst_11 = arith.constant 0.000000e+00 : f32
    %25 = vector.broadcast %cst_11 : f32 to vector<32x128xf32>
    %26 = arith.maximumf %24, %25 : vector<32x128xf32>
    %c64 = arith.constant 64 : index
    %c0_12 = arith.constant 0 : index
    %27 = vector.load %arg4[%c64, %c0_12] : memref<848x32xf32, #tpu.memory_space<vmem>>, vector<16x32xf32>
    %cst_13 = arith.constant dense<0.000000e+00> : vector<16x128xf32>
    %28 = tpu.matmul %27, %26, %cst_13 {dimension_numbers = #tpu.dot_dimension_numbers<[1], [0], [0], [1], [0, 0, 1, 1], [], []>} : vector<16x32xf32>, vector<32x128xf32>, vector<16x128xf32> -> vector<16x128xf32>
    %c80 = arith.constant 80 : index
    %c0_14 = arith.constant 0 : index
    %29 = vector.load %arg4[%c80, %c0_14] : memref<848x32xf32, #tpu.memory_space<vmem>>, vector<16x1xf32>
    %30 = vector.broadcast %29 : vector<16x1xf32> to vector<16x128xf32>
    %31 = arith.addf %28, %30 : vector<16x128xf32>
    %c192 = arith.constant 192 : index
    %c0_15 = arith.constant 0 : index
    %32 = vector.load %arg4[%c192, %c0_15] : memref<848x32xf32, #tpu.memory_space<vmem>>, vector<8x4xf32>
    %cst_16 = arith.constant dense<0.000000e+00> : vector<8x128xf32>
    %33 = tpu.matmul %32, %0, %cst_16 {dimension_numbers = #tpu.dot_dimension_numbers<[1], [0], [0], [1], [0, 0, 1, 1], [], []>} : vector<8x4xf32>, vector<4x128xf32>, vector<8x128xf32> -> vector<8x128xf32>
    %c200 = arith.constant 200 : index
    %c0_17 = arith.constant 0 : index
    %34 = vector.load %arg4[%c200, %c0_17] : memref<848x32xf32, #tpu.memory_space<vmem>>, vector<8x8xf32>
    %cst_18 = arith.constant dense<0.000000e+00> : vector<8x128xf32>
    %35 = tpu.matmul %34, %19, %cst_18 {dimension_numbers = #tpu.dot_dimension_numbers<[1], [0], [0], [1], [0, 0, 1, 1], [], []>} : vector<8x8xf32>, vector<8x128xf32>, vector<8x128xf32> -> vector<8x128xf32>
    %36 = arith.addf %33, %35 : vector<8x128xf32>
    %c208 = arith.constant 208 : index
    %c0_19 = arith.constant 0 : index
    %37 = vector.load %arg4[%c208, %c0_19] : memref<848x32xf32, #tpu.memory_space<vmem>>, vector<8x1xf32>
    %38 = vector.broadcast %37 : vector<8x1xf32> to vector<8x128xf32>
    %39 = arith.addf %36, %38 : vector<8x128xf32>
    %cst_20 = arith.constant 0.000000e+00 : f32
    %40 = vector.broadcast %cst_20 : f32 to vector<8x128xf32>
    %41 = arith.maximumf %39, %40 : vector<8x128xf32>
    %c216 = arith.constant 216 : index
    %c0_21 = arith.constant 0 : index
    %42 = vector.load %arg4[%c216, %c0_21] : memref<848x32xf32, #tpu.memory_space<vmem>>, vector<4x8xf32>
    %cst_22 = arith.constant dense<0.000000e+00> : vector<4x128xf32>
    %43 = tpu.matmul %42, %41, %cst_22 {dimension_numbers = #tpu.dot_dimension_numbers<[1], [0], [0], [1], [0, 0, 1, 1], [], []>} : vector<4x8xf32>, vector<8x128xf32>, vector<4x128xf32> -> vector<4x128xf32>
    %44 = arith.addf %0, %43 : vector<4x128xf32>
    %c224 = arith.constant 224 : index
    %c0_23 = arith.constant 0 : index
    %45 = vector.load %arg4[%c224, %c0_23] : memref<848x32xf32, #tpu.memory_space<vmem>>, vector<4x1xf32>
    %46 = vector.broadcast %45 : vector<4x1xf32> to vector<4x128xf32>
    %47 = arith.addf %44, %46 : vector<4x128xf32>
    %c96 = arith.constant 96 : index
    %c0_24 = arith.constant 0 : index
    %48 = vector.load %arg4[%c96, %c0_24] : memref<848x32xf32, #tpu.memory_space<vmem>>, vector<32x4xf32>
    %cst_25 = arith.constant dense<0.000000e+00> : vector<32x128xf32>
    %49 = tpu.matmul %48, %47, %cst_25 {dimension_numbers = #tpu.dot_dimension_numbers<[1], [0], [0], [1], [0, 0, 1, 1], [], []>} : vector<32x4xf32>, vector<4x128xf32>, vector<32x128xf32> -> vector<32x128xf32>
    %c128 = arith.constant 128 : index
    %c0_26 = arith.constant 0 : index
    %50 = vector.load %arg4[%c128, %c0_26] : memref<848x32xf32, #tpu.memory_space<vmem>>, vector<32x1xf32>
    %51 = vector.broadcast %50 : vector<32x1xf32> to vector<32x128xf32>
    %52 = arith.addf %49, %51 : vector<32x128xf32>
    %cst_27 = arith.constant 0.000000e+00 : f32
    %53 = vector.broadcast %cst_27 : f32 to vector<32x128xf32>
    %54 = arith.maximumf %52, %53 : vector<32x128xf32>
    %c160 = arith.constant 160 : index
    %c0_28 = arith.constant 0 : index
    %55 = vector.load %arg4[%c160, %c0_28] : memref<848x32xf32, #tpu.memory_space<vmem>>, vector<16x32xf32>
    %cst_29 = arith.constant dense<0.000000e+00> : vector<16x128xf32>
    %56 = tpu.matmul %55, %54, %cst_29 {dimension_numbers = #tpu.dot_dimension_numbers<[1], [0], [0], [1], [0, 0, 1, 1], [], []>} : vector<16x32xf32>, vector<32x128xf32>, vector<16x128xf32> -> vector<16x128xf32>
    %c176 = arith.constant 176 : index
    %c0_30 = arith.constant 0 : index
    %57 = vector.load %arg4[%c176, %c0_30] : memref<848x32xf32, #tpu.memory_space<vmem>>, vector<16x1xf32>
    %58 = vector.broadcast %57 : vector<16x1xf32> to vector<16x128xf32>
    %59 = arith.addf %56, %58 : vector<16x128xf32>
    %60 = tpu.concatenate %31, %59 in 0 : vector<16x128xf32>, vector<16x128xf32> -> vector<32x128xf32>
    %c232 = arith.constant 232 : index
    %c0_31 = arith.constant 0 : index
    %61 = vector.load %arg4[%c232, %c0_31] : memref<848x32xf32, #tpu.memory_space<vmem>>, vector<64x32xf32>
    %cst_32 = arith.constant dense<0.000000e+00> : vector<64x128xf32>
    %62 = tpu.matmul %61, %60, %cst_32 {dimension_numbers = #tpu.dot_dimension_numbers<[1], [0], [0], [1], [0, 0, 1, 1], [], []>} : vector<64x32xf32>, vector<32x128xf32>, vector<64x128xf32> -> vector<64x128xf32>
    %c296 = arith.constant 296 : index
    %c0_33 = arith.constant 0 : index
    %63 = vector.load %arg4[%c296, %c0_33] : memref<848x32xf32, #tpu.memory_space<vmem>>, vector<64x1xf32>
    %64 = vector.broadcast %63 : vector<64x1xf32> to vector<64x128xf32>
    %65 = arith.addf %62, %64 : vector<64x128xf32>
    %cst_34 = arith.constant 0.000000e+00 : f32
    %66 = vector.broadcast %cst_34 : f32 to vector<64x128xf32>
    %67 = arith.maximumf %65, %66 : vector<64x128xf32>
    %68 = vector.extract_strided_slice %67 {offsets = [0, 0], sizes = [32, 128], strides = [1, 1]} : vector<64x128xf32> to vector<32x128xf32>
    %69 = vector.extract_strided_slice %67 {offsets = [32, 0], sizes = [32, 128], strides = [1, 1]} : vector<64x128xf32> to vector<32x128xf32>
    %c360 = arith.constant 360 : index
    %c0_35 = arith.constant 0 : index
    %70 = vector.load %arg4[%c360, %c0_35] : memref<848x32xf32, #tpu.memory_space<vmem>>, vector<32x32xf32>
    %cst_36 = arith.constant dense<0.000000e+00> : vector<32x128xf32>
    %71 = tpu.matmul %70, %68, %cst_36 {dimension_numbers = #tpu.dot_dimension_numbers<[1], [0], [0], [1], [0, 0, 1, 1], [], []>} : vector<32x32xf32>, vector<32x128xf32>, vector<32x128xf32> -> vector<32x128xf32>
    %c392 = arith.constant 392 : index
    %c0_37 = arith.constant 0 : index
    %72 = vector.load %arg4[%c392, %c0_37] : memref<848x32xf32, #tpu.memory_space<vmem>>, vector<32x1xf32>
    %73 = vector.broadcast %72 : vector<32x1xf32> to vector<32x128xf32>
    %74 = arith.addf %71, %73 : vector<32x128xf32>
    %cst_38 = arith.constant 0.000000e+00 : f32
    %75 = vector.broadcast %cst_38 : f32 to vector<32x128xf32>
    %76 = arith.maximumf %74, %75 : vector<32x128xf32>
    %c424 = arith.constant 424 : index
    %c0_39 = arith.constant 0 : index
    %77 = vector.load %arg4[%c424, %c0_39] : memref<848x32xf32, #tpu.memory_space<vmem>>, vector<4x32xf32>
    %cst_40 = arith.constant dense<0.000000e+00> : vector<4x128xf32>
    %78 = tpu.matmul %77, %76, %cst_40 {dimension_numbers = #tpu.dot_dimension_numbers<[1], [0], [0], [1], [0, 0, 1, 1], [], []>} : vector<4x32xf32>, vector<32x128xf32>, vector<4x128xf32> -> vector<4x128xf32>
    %c432 = arith.constant 432 : index
    %c0_41 = arith.constant 0 : index
    %79 = vector.load %arg4[%c432, %c0_41] : memref<848x32xf32, #tpu.memory_space<vmem>>, vector<4x1xf32>
    %80 = vector.broadcast %79 : vector<4x1xf32> to vector<4x128xf32>
    %81 = arith.addf %78, %80 : vector<4x128xf32>
    %82 = arith.subf %47, %81 : vector<4x128xf32>
    %c440 = arith.constant 440 : index
    %c0_42 = arith.constant 0 : index
    %83 = vector.load %arg4[%c440, %c0_42] : memref<848x32xf32, #tpu.memory_space<vmem>>, vector<32x32xf32>
    %cst_43 = arith.constant dense<0.000000e+00> : vector<32x128xf32>
    %84 = tpu.matmul %83, %69, %cst_43 {dimension_numbers = #tpu.dot_dimension_numbers<[1], [0], [0], [1], [0, 0, 1, 1], [], []>} : vector<32x32xf32>, vector<32x128xf32>, vector<32x128xf32> -> vector<32x128xf32>
    %c472 = arith.constant 472 : index
    %c0_44 = arith.constant 0 : index
    %85 = vector.load %arg4[%c472, %c0_44] : memref<848x32xf32, #tpu.memory_space<vmem>>, vector<32x1xf32>
    %86 = vector.broadcast %85 : vector<32x1xf32> to vector<32x128xf32>
    %87 = arith.addf %84, %86 : vector<32x128xf32>
    %cst_45 = arith.constant 0.000000e+00 : f32
    %88 = vector.broadcast %cst_45 : f32 to vector<32x128xf32>
    %89 = arith.maximumf %87, %88 : vector<32x128xf32>
    %c504 = arith.constant 504 : index
    %c0_46 = arith.constant 0 : index
    %90 = vector.load %arg4[%c504, %c0_46] : memref<848x32xf32, #tpu.memory_space<vmem>>, vector<4x32xf32>
    %cst_47 = arith.constant dense<0.000000e+00> : vector<4x128xf32>
    %91 = tpu.matmul %90, %89, %cst_47 {dimension_numbers = #tpu.dot_dimension_numbers<[1], [0], [0], [1], [0, 0, 1, 1], [], []>} : vector<4x32xf32>, vector<32x128xf32>, vector<4x128xf32> -> vector<4x128xf32>
    %c512 = arith.constant 512 : index
    %c0_48 = arith.constant 0 : index
    %92 = vector.load %arg4[%c512, %c0_48] : memref<848x32xf32, #tpu.memory_space<vmem>>, vector<4x1xf32>
    %93 = vector.broadcast %92 : vector<4x1xf32> to vector<4x128xf32>
    %94 = arith.addf %91, %93 : vector<4x128xf32>
    %cst_49 = arith.constant -2.000000e+00 : f32
    %cst_50 = arith.constant 2.000000e+00 : f32
    %95 = vector.broadcast %cst_49 : f32 to vector<4x128xf32>
    %96 = arith.maximumf %95, %94 : vector<4x128xf32>
    %97 = vector.broadcast %cst_50 : f32 to vector<4x128xf32>
    %98 = arith.minimumf %97, %96 : vector<4x128xf32>
    %cst_51 = arith.constant 0.000000e+00 : f32
    %99 = vector.broadcast %cst_51 : f32 to vector<4x128xf32>
    %100 = arith.subf %99, %98 : vector<4x128xf32>
    %101 = math.exp %100 : vector<4x128xf32>
    %102 = arith.mulf %82, %101 : vector<4x128xf32>
    %c520 = arith.constant 520 : index
    %c0_52 = arith.constant 0 : index
    %103 = vector.load %arg4[%c520, %c0_52] : memref<848x32xf32, #tpu.memory_space<vmem>>, vector<8x4xf32>
    %cst_53 = arith.constant dense<0.000000e+00> : vector<8x128xf32>
    %104 = tpu.matmul %103, %102, %cst_53 {dimension_numbers = #tpu.dot_dimension_numbers<[1], [0], [0], [1], [0, 0, 1, 1], [], []>} : vector<8x4xf32>, vector<4x128xf32>, vector<8x128xf32> -> vector<8x128xf32>
    %c528 = arith.constant 528 : index
    %c0_54 = arith.constant 0 : index
    %105 = vector.load %arg4[%c528, %c0_54] : memref<848x32xf32, #tpu.memory_space<vmem>>, vector<8x8xf32>
    %cst_55 = arith.constant dense<0.000000e+00> : vector<8x128xf32>
    %106 = tpu.matmul %105, %19, %cst_55 {dimension_numbers = #tpu.dot_dimension_numbers<[1], [0], [0], [1], [0, 0, 1, 1], [], []>} : vector<8x8xf32>, vector<8x128xf32>, vector<8x128xf32> -> vector<8x128xf32>
    %107 = arith.addf %104, %106 : vector<8x128xf32>
    %c536 = arith.constant 536 : index
    %c0_56 = arith.constant 0 : index
    %108 = vector.load %arg4[%c536, %c0_56] : memref<848x32xf32, #tpu.memory_space<vmem>>, vector<8x1xf32>
    %109 = vector.broadcast %108 : vector<8x1xf32> to vector<8x128xf32>
    %110 = arith.addf %107, %109 : vector<8x128xf32>
    %cst_57 = arith.constant 0.000000e+00 : f32
    %111 = vector.broadcast %cst_57 : f32 to vector<8x128xf32>
    %112 = arith.maximumf %110, %111 : vector<8x128xf32>
    %c544 = arith.constant 544 : index
    %c0_58 = arith.constant 0 : index
    %113 = vector.load %arg4[%c544, %c0_58] : memref<848x32xf32, #tpu.memory_space<vmem>>, vector<4x8xf32>
    %cst_59 = arith.constant dense<0.000000e+00> : vector<4x128xf32>
    %114 = tpu.matmul %113, %112, %cst_59 {dimension_numbers = #tpu.dot_dimension_numbers<[1], [0], [0], [1], [0, 0, 1, 1], [], []>} : vector<4x8xf32>, vector<8x128xf32>, vector<4x128xf32> -> vector<4x128xf32>
    %115 = arith.addf %102, %114 : vector<4x128xf32>
    %c552 = arith.constant 552 : index
    %c0_60 = arith.constant 0 : index
    %116 = vector.load %arg4[%c552, %c0_60] : memref<848x32xf32, #tpu.memory_space<vmem>>, vector<4x1xf32>
    %117 = vector.broadcast %116 : vector<4x1xf32> to vector<4x128xf32>
    %118 = arith.addf %115, %117 : vector<4x128xf32>
    %c96_61 = arith.constant 96 : index
    %c0_62 = arith.constant 0 : index
    %119 = vector.load %arg4[%c96_61, %c0_62] : memref<848x32xf32, #tpu.memory_space<vmem>>, vector<32x4xf32>
    %cst_63 = arith.constant dense<0.000000e+00> : vector<32x128xf32>
    %120 = tpu.matmul %119, %118, %cst_63 {dimension_numbers = #tpu.dot_dimension_numbers<[1], [0], [0], [1], [0, 0, 1, 1], [], []>} : vector<32x4xf32>, vector<4x128xf32>, vector<32x128xf32> -> vector<32x128xf32>
    %c128_64 = arith.constant 128 : index
    %c0_65 = arith.constant 0 : index
    %121 = vector.load %arg4[%c128_64, %c0_65] : memref<848x32xf32, #tpu.memory_space<vmem>>, vector<32x1xf32>
    %122 = vector.broadcast %121 : vector<32x1xf32> to vector<32x128xf32>
    %123 = arith.addf %120, %122 : vector<32x128xf32>
    %cst_66 = arith.constant 0.000000e+00 : f32
    %124 = vector.broadcast %cst_66 : f32 to vector<32x128xf32>
    %125 = arith.maximumf %123, %124 : vector<32x128xf32>
    %c160_67 = arith.constant 160 : index
    %c0_68 = arith.constant 0 : index
    %126 = vector.load %arg4[%c160_67, %c0_68] : memref<848x32xf32, #tpu.memory_space<vmem>>, vector<16x32xf32>
    %cst_69 = arith.constant dense<0.000000e+00> : vector<16x128xf32>
    %127 = tpu.matmul %126, %125, %cst_69 {dimension_numbers = #tpu.dot_dimension_numbers<[1], [0], [0], [1], [0, 0, 1, 1], [], []>} : vector<16x32xf32>, vector<32x128xf32>, vector<16x128xf32> -> vector<16x128xf32>
    %c176_70 = arith.constant 176 : index
    %c0_71 = arith.constant 0 : index
    %128 = vector.load %arg4[%c176_70, %c0_71] : memref<848x32xf32, #tpu.memory_space<vmem>>, vector<16x1xf32>
    %129 = vector.broadcast %128 : vector<16x1xf32> to vector<16x128xf32>
    %130 = arith.addf %127, %129 : vector<16x128xf32>
    %131 = tpu.concatenate %31, %130 in 0 : vector<16x128xf32>, vector<16x128xf32> -> vector<32x128xf32>
    %c560 = arith.constant 560 : index
    %c0_72 = arith.constant 0 : index
    %132 = vector.load %arg4[%c560, %c0_72] : memref<848x32xf32, #tpu.memory_space<vmem>>, vector<64x32xf32>
    %cst_73 = arith.constant dense<0.000000e+00> : vector<64x128xf32>
    %133 = tpu.matmul %132, %131, %cst_73 {dimension_numbers = #tpu.dot_dimension_numbers<[1], [0], [0], [1], [0, 0, 1, 1], [], []>} : vector<64x32xf32>, vector<32x128xf32>, vector<64x128xf32> -> vector<64x128xf32>
    %c624 = arith.constant 624 : index
    %c0_74 = arith.constant 0 : index
    %134 = vector.load %arg4[%c624, %c0_74] : memref<848x32xf32, #tpu.memory_space<vmem>>, vector<64x1xf32>
    %135 = vector.broadcast %134 : vector<64x1xf32> to vector<64x128xf32>
    %136 = arith.addf %133, %135 : vector<64x128xf32>
    %cst_75 = arith.constant 0.000000e+00 : f32
    %137 = vector.broadcast %cst_75 : f32 to vector<64x128xf32>
    %138 = arith.maximumf %136, %137 : vector<64x128xf32>
    %139 = vector.extract_strided_slice %138 {offsets = [0, 0], sizes = [32, 128], strides = [1, 1]} : vector<64x128xf32> to vector<32x128xf32>
    %140 = vector.extract_strided_slice %138 {offsets = [32, 0], sizes = [32, 128], strides = [1, 1]} : vector<64x128xf32> to vector<32x128xf32>
    %c688 = arith.constant 688 : index
    %c0_76 = arith.constant 0 : index
    %141 = vector.load %arg4[%c688, %c0_76] : memref<848x32xf32, #tpu.memory_space<vmem>>, vector<32x32xf32>
    %cst_77 = arith.constant dense<0.000000e+00> : vector<32x128xf32>
    %142 = tpu.matmul %141, %139, %cst_77 {dimension_numbers = #tpu.dot_dimension_numbers<[1], [0], [0], [1], [0, 0, 1, 1], [], []>} : vector<32x32xf32>, vector<32x128xf32>, vector<32x128xf32> -> vector<32x128xf32>
    %c720 = arith.constant 720 : index
    %c0_78 = arith.constant 0 : index
    %143 = vector.load %arg4[%c720, %c0_78] : memref<848x32xf32, #tpu.memory_space<vmem>>, vector<32x1xf32>
    %144 = vector.broadcast %143 : vector<32x1xf32> to vector<32x128xf32>
    %145 = arith.addf %142, %144 : vector<32x128xf32>
    %cst_79 = arith.constant 0.000000e+00 : f32
    %146 = vector.broadcast %cst_79 : f32 to vector<32x128xf32>
    %147 = arith.maximumf %145, %146 : vector<32x128xf32>
    %c752 = arith.constant 752 : index
    %c0_80 = arith.constant 0 : index
    %148 = vector.load %arg4[%c752, %c0_80] : memref<848x32xf32, #tpu.memory_space<vmem>>, vector<4x32xf32>
    %cst_81 = arith.constant dense<0.000000e+00> : vector<4x128xf32>
    %149 = tpu.matmul %148, %147, %cst_81 {dimension_numbers = #tpu.dot_dimension_numbers<[1], [0], [0], [1], [0, 0, 1, 1], [], []>} : vector<4x32xf32>, vector<32x128xf32>, vector<4x128xf32> -> vector<4x128xf32>
    %c760 = arith.constant 760 : index
    %c0_82 = arith.constant 0 : index
    %150 = vector.load %arg4[%c760, %c0_82] : memref<848x32xf32, #tpu.memory_space<vmem>>, vector<4x1xf32>
    %151 = vector.broadcast %150 : vector<4x1xf32> to vector<4x128xf32>
    %152 = arith.addf %149, %151 : vector<4x128xf32>
    %153 = arith.subf %118, %152 : vector<4x128xf32>
    %c768 = arith.constant 768 : index
    %c0_83 = arith.constant 0 : index
    %154 = vector.load %arg4[%c768, %c0_83] : memref<848x32xf32, #tpu.memory_space<vmem>>, vector<32x32xf32>
    %cst_84 = arith.constant dense<0.000000e+00> : vector<32x128xf32>
    %155 = tpu.matmul %154, %140, %cst_84 {dimension_numbers = #tpu.dot_dimension_numbers<[1], [0], [0], [1], [0, 0, 1, 1], [], []>} : vector<32x32xf32>, vector<32x128xf32>, vector<32x128xf32> -> vector<32x128xf32>
    %c800 = arith.constant 800 : index
    %c0_85 = arith.constant 0 : index
    %156 = vector.load %arg4[%c800, %c0_85] : memref<848x32xf32, #tpu.memory_space<vmem>>, vector<32x1xf32>
    %157 = vector.broadcast %156 : vector<32x1xf32> to vector<32x128xf32>
    %158 = arith.addf %155, %157 : vector<32x128xf32>
    %cst_86 = arith.constant 0.000000e+00 : f32
    %159 = vector.broadcast %cst_86 : f32 to vector<32x128xf32>
    %160 = arith.maximumf %158, %159 : vector<32x128xf32>
    %c832 = arith.constant 832 : index
    %c0_87 = arith.constant 0 : index
    %161 = vector.load %arg4[%c832, %c0_87] : memref<848x32xf32, #tpu.memory_space<vmem>>, vector<4x32xf32>
    %cst_88 = arith.constant dense<0.000000e+00> : vector<4x128xf32>
    %162 = tpu.matmul %161, %160, %cst_88 {dimension_numbers = #tpu.dot_dimension_numbers<[1], [0], [0], [1], [0, 0, 1, 1], [], []>} : vector<4x32xf32>, vector<32x128xf32>, vector<4x128xf32> -> vector<4x128xf32>
    %c840 = arith.constant 840 : index
    %c0_89 = arith.constant 0 : index
    %163 = vector.load %arg4[%c840, %c0_89] : memref<848x32xf32, #tpu.memory_space<vmem>>, vector<4x1xf32>
    %164 = vector.broadcast %163 : vector<4x1xf32> to vector<4x128xf32>
    %165 = arith.addf %162, %164 : vector<4x128xf32>
    %cst_90 = arith.constant -2.000000e+00 : f32
    %cst_91 = arith.constant 2.000000e+00 : f32
    %166 = vector.broadcast %cst_90 : f32 to vector<4x128xf32>
    %167 = arith.maximumf %166, %165 : vector<4x128xf32>
    %168 = vector.broadcast %cst_91 : f32 to vector<4x128xf32>
    %169 = arith.minimumf %168, %167 : vector<4x128xf32>
    %cst_92 = arith.constant 0.000000e+00 : f32
    %170 = vector.broadcast %cst_92 : f32 to vector<4x128xf32>
    %171 = arith.subf %170, %169 : vector<4x128xf32>
    %172 = math.exp %171 : vector<4x128xf32>
    %173 = arith.mulf %153, %172 : vector<4x128xf32>
    %c0_93 = arith.constant 0 : index
    %c0_94 = arith.constant 0 : index
    %174 = vector.load %arg5[%c0_93, %c0_94] : memref<4x128xf32, #tpu.memory_space<vmem>>, vector<4x128xf32>
    tpu.vector_store %arg5[%c0_93, %c0_94], %173 {strides = array<i32>} : memref<4x128xf32, #tpu.memory_space<vmem>>, vector<4x128xf32>,
    return
  }
  func.func @transform_0(%arg0: i32) -> (i32, i32) {
    %c0_i32 = arith.constant 0 : i32
    %c0_i32_0 = arith.constant 0 : i32
    return %c0_i32, %arg0 : i32, i32
  }
  func.func @transform_1(%arg0: i32) -> (i32, i32) {
    %c0_i32 = arith.constant 0 : i32
    %c0_i32_0 = arith.constant 0 : i32
    return %c0_i32, %arg0 : i32, i32
  }
  func.func @transform_2(%arg0: i32) -> (i32, i32) {
    %c0_i32 = arith.constant 0 : i32
    %c0_i32_0 = arith.constant 0 : i32
    return %c0_i32, %arg0 : i32, i32
  }
  func.func @transform_3(%arg0: i32) -> (i32, i32) {
    %c0_i32 = arith.constant 0 : i32
    %c0_i32_0 = arith.constant 0 : i32
    %c0_i32_1 = arith.constant 0 : i32
    return %c0_i32, %c0_i32_0 : i32, i32
  }
  func.func @transform_4(%arg0: i32) -> (i32, i32) {
    %c0_i32 = arith.constant 0 : i32
    %c0_i32_0 = arith.constant 0 : i32
    return %c0_i32, %arg0 : i32, i32
  }
}

</mosaic_0001>

<bundles_post_ra>
// kernel: tpu_custom_call.1
= control target key start
LH: loop header
LB: loop body
LE: loop exit
PB: predicated region body
PF: predicated region fallthrough
CT: control target
= control target key end

     0   :  { %v21_v3 = vlaneseq  ;;  %v3072_v4 = vmov 0   ;;  %vm273_vm0 = vcmask 64512   ;;  %s3666_s0 = inlined_call_operand.vmem [shape: f32[1,128], index: 0, kind: input, shape index: {}]   ;;  %s3667_s1 = inlined_call_operand.vmem [shape: f32[8,128], index: 1, kind: input, shape index: {}]   ;;  %s3668_s2 = inlined_call_operand.vmem [shape: f32[4,128], index: 2, kind: input, shape index: {}]   ;;  %s3669_s3 = inlined_call_operand.vmem [shape: f32[848,32], index: 3, kind: input, shape index: {}]   ;;  %s3670_s4 = inlined_call_operand.hbm [shape: f32[4,128], index: 4, kind: output, shape index: {}]  }
   0x1   :  { %v19_v0 = vld [vmem:[%s3667_s1] sm:$0xff]  ;;  %v252_v1 = vld [vmem:[%s3669_s3 + $0x38] sm:$0xff]  ;;  %v250_v2 = vld [vmem:[%s3669_s3 + $0x28] sm:$0xff]  ;;  %3039 = vset.pattern.permute.xlu1 %v3072_v4  ;;  %3038 = vset.pattern.permute.xlu0 %v3072_v4 }
   0x2   :  { %v245_v5 = vld [vmem:[%s3669_s3] sm:$0xff]  ;;  %2797 = vmatprep.subr.mxu0 %v19_v0  ;;  %270 = vperm.xlu0 %3038, %v252_v1   ;;  %v246_v6 = vld [vmem:[%s3669_s3 + $0x8] sm:$0xff]  ;;  %v3122_v7 = vshrl.u32 %v21_v3, 7  ;;  %v251_v8 = vld [vmem:[%s3669_s3 + $0x30] sm:$0xff] }
   0x3   :  { %260 = vperm.xlu1 %3039, %v250_v2   ;;  %2798 = vmatpush3.msra.mxu0 %v19_v0  ;;  %v247_v9 = vld [vmem:[%s3669_s3 + $0x10] sm:$0xff]  ;;  %v249_v10 = vld [vmem:[%s3669_s3 + $0x20] sm:$0xff]  ;;  %v248_v12 = vld [vmem:[%s3669_s3 + $0x18] sm:$0xff] }
   0x4   :  { %2799 = vmatprep.mubr.msk.f32.mxu0 %vm273_vm0, %v245_v5  ;;  %vm23_vm1 = vcmp.lt.s32.totalorder %v3122_v7, 4  ;;  %v2600_v11 = vadd.s32 4294967292, %v3122_v7  ;;  %v624_v14 = vld [vmem:[%s3669_s3 + $0xd0] sm:$0xff]  ;;  %v707_v16 = vld [vmem:[%s3669_s3 + $0xe0] sm:$0xf]  ;;  %v721_v18 = vld [vmem:[%s3669_s3 + $0x98] sm:$0xff] }
   0x5   :  { %2800 = vmatmul.mubr.msk.f32.vlgmr.msra.gmra.mxu0 %vm273_vm0, %v246_v6  ;;  %v720_v20 = vld [vmem:[%s3669_s3 + $0x90] sm:$0xff]  ;;  %v719_v21 = vld [vmem:[%s3669_s3 + $0x88] sm:$0xff]  ;;  %v718_v22 = vld [vmem:[%s3669_s3 + $0x80] sm:$0xff] }
   0x6   :  { %265 = vperm.xlu0 %3038, %v251_v8   ;;  %2802 = vmatprep.mubr.msk.f32.mxu0 %vm273_vm0, %v247_v9  ;;  %v25_v13 = vsel %vm23_vm1, %v3122_v7, %v2600_v11  ;;  %v849_v23 = vld [vmem:[%s3669_s3 + $0xb8] sm:$0xff]  ;;  %v848_v24 = vld [vmem:[%s3669_s3 + $0xb0] sm:$0xff] }
   0x7   :  { %255 = vperm.xlu1 %3039, %v249_v10   ;;  %v26_v15 = vcvt.s32.f32 %v25_v13 }
   0x9   :  { %2803 = vmatmul.mubr.msk.f32.gmra.mxu0 %vm273_vm0, %v248_v12  ;;  %v27_v17 = vmul.f32 -3.0701134, %v26_v15 }
   0xa   :  { %627 = vperm.xlu0 %3038, %v624_v14  }
   0xb   :  { %710 = vperm.xlu1 %3039, %v707_v16   ;;  %v28_v19 = vmul.f32 1.442695, %v27_v17 }
   0xd   :  { %3040 = vpow2.f32 %v28_v19 }
   0xe   :  { %739 = vperm.xlu0 %3038, %v721_v18  }
   0xf   :  { %734 = vperm.xlu1 %3039, %v720_v20  }
  0x12   :  { %729 = vperm.xlu0 %3038, %v719_v21  }
  0x13   :  { %724 = vperm.xlu1 %3039, %v718_v22  }
  0x14   :  { %9 = vsyncpa [#allocation3], 0  ;;  %v378_v25 = vld [vmem:[%s3669_s3 + $0x58] sm:$0xff]  ;;  %v377_v26 = vld [vmem:[%s3669_s3 + $0x50] sm:$0xff]  ;;  %v3073_v49 = vmov 683565275  }
  0x15   :  { %v2601_v27 = vld [vmem:[%s3666_s0] ss:$0 sm:$0xff]  ;;  %v951_v31 = vld [vmem:[%s3669_s3 + $0x138] sm:$0xff]  ;;  %v950_v33 = vld [vmem:[%s3669_s3 + $0x130] sm:$0xff]  ;;  %v3074_v51 = vmov 2475754826  }
  0x16   :  { %857 = vperm.xlu0 %3038, %v849_v23   ;;  %v952_v29 = vld [vmem:[%s3669_s3 + $0x140] sm:$0xff]  ;;  %v949_v35 = vld [vmem:[%s3669_s3 + $0x128] sm:$0xff]  ;;  %v955_v40 = vld [vmem:[%s3669_s3 + $0x158] sm:$0xff]  ;;  %v3075_v53 = vmov 2131351028   ;;  %vm389_vm9 = vcmask 261120  }
  0x17   :  { %852 = vperm.xlu1 %3039, %v848_v24   ;;  %v956_v38 = vld [vmem:[%s3669_s3 + $0x160] sm:$0xff]  ;;  %v954_v43 = vld [vmem:[%s3669_s3 + $0x150] sm:$0xff]  ;;  %v953_v45 = vld [vmem:[%s3669_s3 + $0x148] sm:$0xff]  ;;  %v3076_v55 = vmov 2102212464   ;;  %vm3080_vm10 = vmmov 0  }
  0x18   :  { %v3077_v57 = vmov 920167782   ;;  %v1141_v59 = vld [vmem:[%s3669_s3 + $0x1a0] sm:$0xff]  ;;  %v1140_v0 = vld [vmem:[%s3669_s3 + $0x198] sm:$0xff]  ;;  %v3078_v2 = vmov 1326507024  }
  0x19   :  { %v1139_v11 = vld [vmem:[%s3669_s3 + $0x190] sm:$0xff]  ;;  %v1138_v16 = vld [vmem:[%s3669_s3 + $0x188] sm:$0xff]  ;;  %s3081_s0 = smov [#allocation2]  }
  0x1a   :  { %v3041_v28 = vpop.eup %3040  ;;  %386 = vperm.xlu0 %3038, %v378_v25   ;;  %v1351_v25 = vld [vmem:[%s3669_s3 + $0x1f0] sm:$0xff]  ;;  %s2592_s7 = sshll.u32 %s3081_s0, 4  ;;  %s2593_s7 = int_to_ptr.vmem [resolvable:$true] %s2592_s7 }
  0x1b   :  { %381 = vperm.xlu1 %3039, %v377_v26   ;;  %v3181_v30 = vmul.f32 %v3041_v28, %v2601_v27  ;;  %p3055_p1 = scmp.lt.s32.totalorder %s2593_s7, %s2593_s7 }
  0x1d   :  { %v40_v32 = vand.u32 2139095040, %v3181_v30  ;;  %v37_v36 = vand.u32 2147483647, %v3181_v30  ;;  %vm39_vm11 = vcmp.lt.s32.totalorder %v3181_v30, 0 }
  0x1e   :  { %974 = vperm.xlu0 %3038, %v952_v29  }
  0x1f   :  { %969 = vperm.xlu1 %3039, %v951_v31   ;;  %v41_v34 = vshrl.u32 %v40_v32, 23  ;;  %v44_v41 = vand.u32 8388607, %v37_v36  ;;  %v1350_v31 = vld [vmem:[%s3669_s3 + $0x1e8] sm:$0xff]  ;;  %vm38_vm12 = vcmp.le.f32.partialorder %v37_v36, 0.7853982 }
  0x20   :  { %v2375_v36 = vld [vmem:[%s3669_s3 + $0x328] sm:$0xff] }
  0x21   :  { %v2602_v37 = vadd.s32 4294967169, %v41_v34  ;;  %v45_v46 = vor.u32 8388608, %v44_v41 }
  0x22   :  { %964 = vperm.xlu0 %3038, %v950_v33   ;;  %v1349_v33 = vld [vmem:[%s3669_s3 + $0x1e0] sm:$0xff] }
  0x23   :  { %959 = vperm.xlu1 %3039, %v949_v35   ;;  %v47_v39 = vadd.s32 1, %v2602_v37  ;;  %v85_v4 = vshll.u32 %v45_v46, 8  ;;  %v1348_v35 = vld [vmem:[%s3669_s3 + $0x1d8] sm:$0xff] }
  0x25   :  { %vm48_vm2 = vcmp.gt.s32.totalorder %v47_v39, 0 }
  0x26   :  { %994 = vperm.xlu0 %3038, %v956_v38   ;;  %v49_v42 = vsel %vm48_vm2, %v47_v39, 0  ;;  %v1474_v39 = vld [vmem:[%s3669_s3 + $0x200] sm:$0xf] }
  0x27   :  { %989 = vperm.xlu1 %3039, %v955_v40   ;;  %v51_v44 = vand.u32 31, %v49_v42  ;;  %v50_v47 = vshrl.u32 %v49_v42, 5  ;;  %v1264_v40 = vld [vmem:[%s3669_s3 + $0x1b0] sm:$0xf] }
  0x29   :  { %v52_v48 = vsub.s32 32, %v51_v44  ;;  %v54_v50 = vshll.u32 %v3073_v49, %v51_v44  ;;  %v57_v52 = vshll.u32 %v3074_v51, %v51_v44  ;;  %v60_v54 = vshll.u32 %v3075_v53, %v51_v44 }
  0x2a   :  { %984 = vperm.xlu0 %3038, %v954_v43   ;;  %v63_v56 = vshll.u32 %v3076_v55, %v51_v44  ;;  %v66_v58 = vshll.u32 %v3077_v57, %v51_v44  ;;  %vm69_vm3 = vcmp.lt.s32.totalorder %v50_v47, 1  ;;  %vm72_vm4 = vcmp.lt.s32.totalorder %v50_v47, 4  ;;  %v1710_v43 = vld [vmem:[%s3669_s3 + $0x218] sm:$0xff]  ;;  %v1793_v44 = vld [vmem:[%s3669_s3 + $0x228] sm:$0xf] }
  0x2b   :  { %979 = vperm.xlu1 %3039, %v953_v45   ;;  %v53_v60 = vshrl.u32 %v3073_v49, %v52_v48  ;;  %v55_v61 = vshrl.u32 %v3074_v51, %v52_v48  ;;  %v58_v62 = vshrl.u32 %v3075_v53, %v52_v48  ;;  %v61_v63 = vshrl.u32 %v3076_v55, %v52_v48  ;;  %v1976_v51 = vld [vmem:[%s3669_s3 + $0x278] sm:$0xff]  ;;  %v1982_v55 = vld [vmem:[%s3669_s3 + $0x2a8] sm:$0xff] }
  0x2c   :  { %v64_v1 = vshrl.u32 %v3077_v57, %v52_v48  ;;  %v67_v3 = vshrl.u32 %v3078_v2, %v52_v48  ;;  %vm70_vm5 = vcmp.lt.s32.totalorder %v50_v47, 2  ;;  %vm71_vm6 = vcmp.lt.s32.totalorder %v50_v47, 3  ;;  %v1978_v47 = vld [vmem:[%s3669_s3 + $0x288] sm:$0xff]  ;;  %v1977_v48 = vld [vmem:[%s3669_s3 + $0x280] sm:$0xff] }
  0x2d   :  { %v56_v5 = vor.u32 %v55_v61, %v54_v50  ;;  %v59_v6 = vor.u32 %v58_v62, %v57_v52  ;;  %v62_v8 = vor.u32 %v61_v63, %v60_v54  ;;  %v1975_v52 = vld [vmem:[%s3669_s3 + $0x270] sm:$0xff]  ;;  %v1980_v62 = vld [vmem:[%s3669_s3 + $0x298] sm:$0xff] }
  0x2e   :  { %1159 = vperm.xlu0 %3038, %v1141_v59   ;;  %v65_v9 = vor.u32 %v64_v1, %v63_v56  ;;  %v68_v10 = vor.u32 %v67_v3, %v66_v58  ;;  %v1981_v56 = vld [vmem:[%s3669_s3 + $0x2a0] sm:$0xff]  ;;  %v1979_v63 = vld [vmem:[%s3669_s3 + $0x290] sm:$0xff] }
  0x2f   :  { %1154 = vperm.xlu1 %3039, %v1140_v0   ;;  %v73_v12 = vsel %vm69_vm3, %v53_v60, %v56_v5  ;;  %v74_v13 = vsel %vm72_vm4, %v62_v8, 2102212464  ;;  %v77_v14 = vsel %vm69_vm3, %v56_v5, %v59_v6  ;;  %v81_v15 = vsel %vm69_vm3, %v59_v6, %v62_v8  ;;  %v2166_v5 = vld [vmem:[%s3669_s3 + $0x2e0] sm:$0xff] }
  0x30   :  { %v75_v17 = vsel %vm71_vm6, %v59_v6, %v74_v13  ;;  %v78_v18 = vsel %vm72_vm4, %v65_v9, 920167782  ;;  %v82_v19 = vsel %vm72_vm4, %v68_v10, 1326507024  ;;  %v375_v6 = vld [vmem:[%s3669_s3 + $0x40] sm:$0xff]  ;;  %v3079_v10 = vmov 0.0  }
  0x31   :  { %v79_v20 = vsel %vm71_vm6, %v62_v8, %v78_v18  ;;  %v83_v21 = vsel %vm71_vm6, %v65_v9, %v82_v19  ;;  %v76_v22 = vsel %vm70_vm5, %v73_v12, %v75_v17  ;;  %2813 = vmatprep.mubr.msk.f32.mxu1 %vm389_vm9, %v375_v6  ;;  %2816 = vmatprep.subr.mxu0 %v3079_v10  ;;  %v2165_v12 = vld [vmem:[%s3669_s3 + $0x2d8] sm:$0xff]  ;;  %v2164_v13 = vld [vmem:[%s3669_s3 + $0x2d0] sm:$0xff]  ;;  %vm546_vm6 = vcmask 31744  }
  0x32   :  { %1149 = vperm.xlu0 %3038, %v1139_v11   ;;  %v80_v23 = vsel %vm70_vm5, %v77_v14, %v79_v20  ;;  %v84_v24 = vsel %vm70_vm5, %v81_v15, %v83_v21  ;;  %v92_v32 = vmul.u32 %v85_v4, %v76_v22  ;;  %2818 = vmatprep.mubr.msk.f32.mxu0 %vm3080_vm10, %v3079_v10  ;;  %v2377_v17 = vld [vmem:[%s3669_s3 + $0x338] sm:$0xff]  ;;  %v2376_v18 = vld [vmem:[%s3669_s3 + $0x330] sm:$0xff]  ;;  %v2374_v22 = vld [vmem:[%s3669_s3 + $0x320] sm:$0xff]  ;;  %vm129_vm5 = vweird.f32 %v3181_v30 }
  0x33   :  { %1144 = vperm.xlu1 %3039, %v1138_v16   ;;  %v3229_v26 = vmul.u32.u64.low %v85_v4, %v84_v24  ;;  %v3230_v27 = vmul.u32.u64.high %v85_v4, %v84_v24, %v3229_v26  ;;  %v3232_v28 = vmul.u32.u64.low %v85_v4, %v80_v23  ;;  %v3233_v29 = vmul.u32.u64.high %v85_v4, %v80_v23, %v3232_v28  ;;  %v2167_v4 = vld [vmem:[%s3669_s3 + $0x2e8] sm:$0xff] }
  0x34   :  { %v2500_v24 = vld [vmem:[%s3669_s3 + $0x348] sm:$0xf]  ;;  %v2290_v26 = vld [vmem:[%s3669_s3 + $0x2f8] sm:$0xf] }
  0x35   :  { %vm94_vm7 = vc.u32 %v3230_v27, %v3232_v28  ;;  %v95_v34 = vadd.s32 1, %v3233_v29  ;;  %v93_v57 = vadd.s32 %v3232_v28, %v3230_v27 }
  0x36   :  { %1369 = vperm.xlu0 %3038, %v1351_v25  }
  0x37   :  { %1364 = vperm.xlu1 %3039, %v1350_v31   ;;  %v96_v37 = vsel %vm94_vm7, %v95_v34, %v3233_v29 }
  0x38   :  { %v97_v38 = vadd.s32 %v96_v37, %v92_v32 }
  0x3a   :  { %1359 = vperm.xlu0 %3038, %v1349_v33   ;;  %v98_v41 = vadd.s32 536870912, %v97_v38 }
  0x3b   :  { %1354 = vperm.xlu1 %3039, %v1348_v35  }
  0x3c   :  { %v3253_v42 = vshrl.u32 %v98_v41, 30 }
  0x3e   :  { %1477 = vperm.xlu0 %3038, %v1474_v39   ;;  %v100_v45 = vshll.u32 %v3253_v42, 30  ;;  %v123_v15 = vsub.s32 4, %v3253_v42 }
  0x3f   :  { %1267 = vperm.xlu1 %3039, %v1264_v40  }
  0x40   :  { %v101_v46 = vsub.s32 %v97_v38, %v100_v45  ;;  %v124_v20 = vsel %vm39_vm11, %v123_v15, %v3253_v42 }
  0x41   :  { %v126_v23 = vsel %vm38_vm12, 0, %v124_v20  ;;  %v3403_v20 = vld [vmem:[%s3669_s3 + $0xa0] sm:$0xff] }
  0x42   :  { %1713 = vperm.xlu0 %3038, %v1710_v43   ;;  %v103_v49 = vsub.s32 0, %v101_v46  ;;  %v130_v25 = vadd.s32 3, %v126_v23  ;;  %v234_v28 = vand.u32 3, %v126_v23  ;;  %v472_v43 = vld [vmem:[%s3669_s3 + $0xc8] sm:$0xff] }
  0x43   :  { %1796 = vperm.xlu1 %3039, %v1793_v44  }
  0x44   :  { %v2603_v50 = vmin.u32 %v103_v49, %v101_v46  ;;  %v131_v27 = vand.u32 3, %v130_v25  ;;  %vm239_vm14 = vcmp.eq.s32.totalorder %v234_v28, 2  ;;  %vm236_vm2 = vcmp.eq.s32.totalorder %v234_v28, 0 }
  0x45   :  { %vm235_vm4 = vcmp.lt.s32.totalorder %v234_v28, 2 }
  0x46   :  { %2000 = vperm.xlu0 %3038, %v1978_v47   ;;  %v105_v53 = vclz %v2603_v50  ;;  %vm136_vm13 = vcmp.eq.s32.totalorder %v131_v27, 2  ;;  %vm133_vm15 = vcmp.eq.s32.totalorder %v131_v27, 0  ;;  %vm132_vm3 = vcmp.lt.s32.totalorder %v131_v27, 2 }
  0x47   :  { %1995 = vperm.xlu1 %3039, %v1977_v48  }
  0x48   :  { %v2604_v54 = vadd.s32 4294967294, %v105_v53 }
  0x4a   :  { %1990 = vperm.xlu0 %3038, %v1976_v51   ;;  %vm2605_vm8 = vcmp.lt.s32.totalorder %v2604_v54, 0 }
  0x4b   :  { %1985 = vperm.xlu1 %3039, %v1975_v52   ;;  %v108_v58 = vsel %vm2605_vm8, 0, %v2604_v54 }
  0x4c   :  { %v109_v59 = vsub.s32 32, %v108_v58  ;;  %v110_v60 = vshll.u32 %v101_v46, %v108_v58  ;;  %v113_v61 = vsub.s32 4294967266, %v108_v58 }
  0x4e   :  { %2020 = vperm.xlu0 %3038, %v1982_v55   ;;  %v111_v0 = vshrl.u32 %v93_v57, %v109_v59  ;;  %v114_v1 = vadd.s32 127, %v113_v61  ;;  %v376_v59 = vld [vmem:[%s3669_s3 + $0x48] sm:$0xff]  ;;  %v471_v61 = vld [vmem:[%s3669_s3 + $0xc0] sm:$0xff] }
  0x4f   :  { %2015 = vperm.xlu1 %3039, %v1981_v56  }
  0x50   :  { %v112_v2 = vor.u32 %v111_v0, %v110_v60  ;;  %v115_v3 = vshll.u32 %v114_v1, 23  ;;  %v18_v60 = vld [vmem:[%s3668_s2] sm:$0xf] }
  0x52   :  { %2010 = vperm.xlu0 %3038, %v1980_v62   ;;  %v116_v8 = vor.u32 4788187, %v115_v3  ;;  %v119_v9 = vcvt.s32.f32 %v112_v2 }
  0x53   :  { %2005 = vperm.xlu1 %3039, %v1979_v63  }
  0x54   :  { %v117_v11 = vand.u32 2147483647, %v116_v8 }
  0x56   :  { %2185 = vperm.xlu0 %3038, %v2167_v4   ;;  %v120_v14 = vmul.f32 %v119_v9, %v117_v11  ;;  %v632_v9 = vld [vmem:[%s3669_s3 + $0xd8] sm:$0xf]  ;;  %v3369_v11 = vld [vmem:[%s3669_s3 + $0x60] sm:$0xff] }
  0x57   :  { %2180 = vperm.xlu1 %3039, %v2166_v5  }
  0x58   :  { %v121_v16 = vxor.u32 2147483648, %v120_v14 }
  0x5a   :  { %2175 = vperm.xlu0 %3038, %v2165_v12   ;;  %v122_v19 = vsel %vm39_vm11, %v121_v16, %v120_v14 }
  0x5b   :  { %2170 = vperm.xlu1 %3039, %v2164_v13   ;;  %v125_v21 = vsel %vm38_vm12, %v3181_v30, %v122_v19  ;;  %v3396_v19 = vld [vmem:[%s3669_s3 + $0x78] sm:$0xff] }
  0x5c   :  { %3042 = vcosq.f32 %v125_v21 }
  0x5d   :  { %3044 = vsinq.f32 %v125_v21 }
  0x5e   :  { %2395 = vperm.xlu0 %3038, %v2377_v17   ;;  %v3378_v17 = vld [vmem:[%s3669_s3 + $0x68] sm:$0xff] }
  0x5f   :  { %2390 = vperm.xlu1 %3039, %v2376_v18   ;;  %v3385_v18 = vld [vmem:[%s3669_s3 + $0x70] sm:$0xff] }
  0x62   :  { %2385 = vperm.xlu0 %3038, %v2375_v36  }
  0x63   :  { %2380 = vperm.xlu1 %3039, %v2374_v22  }
  0x66   :  { %2503 = vperm.xlu0 %3038, %v2500_v24  }
  0x67   :  { %2293 = vperm.xlu1 %3039, %v2290_v26  }
  0x69   :  { %v3043_v29 = vpop.eup %3042 }
  0x6a   :  { %v3045_v31 = vpop.eup %3044  ;;  %v137_v32 = vxor.u32 2147483648, %v3043_v29 }
  0x6b   :  { %v134_v33 = vxor.u32 2147483648, %v3045_v31 }
  0x6c   :  { %v138_v34 = vsel %vm136_vm13, %v137_v32, %v3045_v31  ;;  %v241_v35 = vsel %vm239_vm14, %v137_v32, %v3045_v31 }
  0x6d   :  { %v135_v37 = vsel %vm133_vm15, %v3043_v29, %v134_v33  ;;  %v238_v38 = vsel %vm236_vm2, %v3043_v29, %v134_v33 }
  0x6e   :  { %v139_v39 = vsel %vm132_vm3, %v135_v37, %v138_v34  ;;  %v242_v40 = vsel %vm235_vm4, %v238_v38, %v241_v35  ;;  %v3422_v38 = vld [vmem:[%s3669_s3 + $0xa8] sm:$0xff] }
  0x6f   :  { %v140_v41 = vsel %vm129_vm5, nan, %v139_v39  ;;  %v243_v42 = vsel %vm129_vm5, nan, %v242_v40  ;;  %v941_v39 = vld [vmem:[%s3669_s3 + $0xe8] sm:$0xff] }
  0x70   :  { %v3336_v44 = vsel %vm23_vm1, %v140_v41, %v243_v42  ;;  %vm550_vm1 = vcmask 1043456  }
  0x71   :  { %2817 = vmatpush3.msra.mxu0 %v3336_v44 }
  0x72   :  { %2819 = vmatmul.mubr.msk.f32.vlgmr.msra.gmra.mxu0 %vm273_vm0, %v472_v43  ;;  %2826 = vmatprep.subr.mxu0 %v3079_v10 }
  0x73   :  { %2828 = vmatprep.mubr.msk.f32.mxu0 %vm3080_vm10, %v3079_v10 }
  0x7d   :  { %v271_v30 = vpop.permute.xlu0 %270 }
  0x7e   :  { %v261_v46 = vpop.permute.xlu1 %260 }
  0x81   :  { %v266_v50 = vpop.permute.xlu0 %265 }
  0x82   :  { %v256_v54 = vpop.permute.xlu1 %255 }
  0x85   :  { %v628_v4 = vpop.permute.xlu0 %627 }
  0x86   :  { %v711_v14 = vpop.permute.xlu1 %710 }
  0x89   :  { %v3407_v21 = vpop.permute.xlu0 %739 }
  0x8a   :  { %v3409_v22 = vpop.permute.xlu1 %734 }
  0x8d   :  { %v3412_v26 = vpop.permute.xlu0 %729 }
  0x8e   :  { %v3416_v32 = vpop.permute.xlu1 %724 }
  0x91   :  { %v3430_v40 = vpop.permute.xlu0 %857 }
  0x92   :  { %v3432_v41 = vpop.permute.xlu1 %852 }
  0xc5   :  { %v2801_v45 = vpop.f32.mrf.mxu0 }
  0xc6   :  { %v358_v7 = vadd.f32 %v2801_v45, %v261_v46  ;;  %v387_v46 = vpop.permute.xlu0 %386 }
  0xc7   :  { %v352_v47 = vpop.f32.mrf.mxu0 }
  0xc8   :  { %v353_v55 = vadd.f32 %v352_v47, %v256_v54  ;;  %v372_v57 = vmax.f32 %v358_v7, 0.0  ;;  %v944_v7 = vld [vmem:[%s3669_s3 + $0x100] sm:$0xff]  ;;  %v947_v54 = vld [vmem:[%s3669_s3 + $0x118] sm:$0xff] }
  0xc9   :  { %v2804_v48 = vpop.f32.mrf.mxu0 }
  0xca   :  { %v368_v49 = vadd.f32 %v2804_v48, %v271_v30  ;;  %v371_v58 = vmax.f32 %v353_v55, 0.0  ;;  %v382_v48 = vpop.permute.xlu1 %381  ;;  %v948_v55 = vld [vmem:[%s3669_s3 + $0x120] sm:$0xff] }
  0xcb   :  { %v362_v51 = vpop.f32.mrf.mxu0 }
  0xcc   :  { %v374_v52 = vmax.f32 %v368_v49, 0.0  ;;  %v363_v53 = vadd.f32 %v362_v51, %v266_v50  ;;  %v942_v50 = vld [vmem:[%s3669_s3 + $0xf0] sm:$0xff]  ;;  %v943_v51 = vld [vmem:[%s3669_s3 + $0xf8] sm:$0xff] }
  0xce   :  { %v373_v56 = vmax.f32 %v363_v53, 0.0  ;;  %2805 = vmatprep.subr.mxu1 %v374_v52  ;;  %v946_v53 = vld [vmem:[%s3669_s3 + $0x110] sm:$0xff] }
  0xcf   :  { %2806 = vmatpush3.msra.mxu1 %v374_v52  ;;  %v945_v52 = vld [vmem:[%s3669_s3 + $0x108] sm:$0xff] }
  0xd0   :  { %2807 = vmatprep.subr.mxu1 %v373_v56 }
  0xd1   :  { %2808 = vmatpush3.msra.mxu1 %v373_v56  ;;  %v1134_v56 = vld [vmem:[%s3669_s3 + $0x168] sm:$0xff] }
  0xd2   :  { %2809 = vmatprep.subr.mxu1 %v372_v57 }
  0xd3   :  { %2810 = vmatpush3.msra.mxu1 %v372_v57  ;;  %v1344_v57 = vld [vmem:[%s3669_s3 + $0x1b8] sm:$0xff] }
  0xd4   :  { %2811 = vmatprep.subr.mxu1 %v371_v58 }
  0xd5   :  { %2812 = vmatpush3.msra.mxu1 %v371_v58  ;;  %v975_v58 = vpop.permute.xlu0 %974 }
  0xd6   :  { %2814 = vmatmul.mubr.msk.f32.vlgmr.msra.gmra.mxu1 %vm389_vm9, %v376_v59  ;;  %2821 = vmatprep.subr.mxu1 %v3079_v10  ;;  %v970_v59 = vpop.permute.xlu1 %969 }
  0xd7   :  { %2822 = vmatpush3.msk.msra.mxu1 %vm550_vm1, %v18_v60  ;;  %2823 = vmatprep.mubr.msk.f32.mxu1 %vm3080_vm10, %v3079_v10 }
  0xda   :  { %2824 = vmatmul.mubr.msk.f32.vlgmr.msra.gmra.mxu1 %vm546_vm6, %v471_v61  ;;  %v965_v61 = vpop.permute.xlu0 %964 }
  0xdb   :  { %2833 = vmatprep.mubr.msk.f32.mxu1 %vm546_vm6, %v3369_v11 }
 0x132   :  { %v542_v62 = vpop.f32.mrf.mxu0 }
 0x134   :  { %v2820_v63 = vpop.f32.mrf.mxu0 }
 0x135   :  { %v960_v63 = vpop.permute.xlu1 %959 }
 0x196   :  { %v3358_v0 = vpop.f32.mrf.mxu1 }
 0x197   :  { %v3437_v47 = vadd.f32 %v3358_v0, %v387_v46  ;;  %v1346_v46 = vld [vmem:[%s3669_s3 + $0x1c8] sm:$0xff] }
 0x198   :  { %v3360_v1 = vpop.f32.mrf.mxu1 }
 0x199   :  { %v3440_v49 = vadd.f32 %v3360_v1, %v382_v48  ;;  %v1347_v48 = vld [vmem:[%s3669_s3 + $0x1d0] sm:$0xff] }
 0x19a   :  { %v620_v2 = vpop.f32.mrf.mxu1 }
 0x19b   :  { %v621_v3 = vadd.f32 %v620_v2, %v542_v62 }
 0x19c   :  { %v2825_v5 = vpop.f32.mrf.mxu1 }
 0x19d   :  { %v630_v6 = vadd.f32 %v628_v4, %v621_v3 }
 0x19f   :  { %v631_v8 = vmax.f32 %v630_v6, 0.0  ;;  %v995_v6 = vpop.permute.xlu0 %994 }
 0x1a1   :  { %2827 = vmatpush3.msra.mxu0 %v631_v8 }
 0x1a2   :  { %2829 = vmatmul.mubr.msk.f32.vlgmr.msra.gmra.mxu0 %vm273_vm0, %v632_v9 }
 0x1a3   :  { %2847 = vmatprep.mubr.msk.f32.mxu0 %vm389_vm9, %v3403_v20 }
 0x262   :  { %v702_v12 = vpop.f32.mrf.mxu0 }
 0x263   :  { %v706_v13 = vadd.f32 %v702_v12, %v18_v60 }
 0x264   :  { %v2830_v15 = vpop.f32.mrf.mxu0 }
 0x265   :  { %v3373_v16 = vadd.f32 %v711_v14, %v706_v13  ;;  %v990_v13 = vpop.permute.xlu1 %989 }
 0x267   :  { %2831 = vmatprep.subr.msk.mxu1 %vm550_vm1, %v3373_v16 }
 0x268   :  { %2832 = vmatpush3.msk.msra.mxu1 %vm550_vm1, %v3373_v16 }
 0x269   :  { %2834 = vmatmul.mubr.msk.f32.vlgmr.msra.gmra.mxu1 %vm546_vm6, %v3378_v17 }
 0x26a   :  { %2836 = vmatprep.mubr.msk.f32.mxu1 %vm546_vm6, %v3385_v18 }
 0x26d   :  { %2837 = vmatmul.mubr.msk.f32.gmra.mxu1 %vm546_vm6, %v3396_v19 }
 0x26e   :  { %2858 = vmatprep.mubr.msk.f32.mxu1 %vm389_vm9, %v941_v39 }
 0x329   :  { %v2835_v36 = vpop.f32.mrf.mxu1 }
 0x32a   :  { %v829_v28 = vadd.f32 %v2835_v36, %v3412_v26 }
 0x32b   :  { %v823_v23 = vpop.f32.mrf.mxu1 }
 0x32c   :  { %v824_v33 = vadd.f32 %v823_v23, %v3416_v32  ;;  %v843_v35 = vmax.f32 %v829_v28, 0.0  ;;  %v1135_v28 = vld [vmem:[%s3669_s3 + $0x170] sm:$0xff] }
 0x32d   :  { %v2838_v24 = vpop.f32.mrf.mxu1 }
 0x32e   :  { %v839_v25 = vadd.f32 %v2838_v24, %v3407_v21  ;;  %v842_v37 = vmax.f32 %v824_v33, 0.0 }
 0x32f   :  { %v833_v27 = vpop.f32.mrf.mxu1 }
 0x330   :  { %v845_v29 = vmax.f32 %v839_v25, 0.0  ;;  %v834_v31 = vadd.f32 %v833_v27, %v3409_v22  ;;  %v985_v25 = vpop.permute.xlu0 %984 }
 0x332   :  { %v844_v34 = vmax.f32 %v834_v31, 0.0  ;;  %2839 = vmatprep.subr.mxu0 %v845_v29 }
 0x333   :  { %2840 = vmatpush3.msra.mxu0 %v845_v29 }
 0x334   :  { %2841 = vmatprep.subr.mxu0 %v844_v34 }
 0x335   :  { %2842 = vmatpush3.msra.mxu0 %v844_v34  ;;  %v1136_v34 = vld [vmem:[%s3669_s3 + $0x178] sm:$0xff] }
 0x336   :  { %2843 = vmatprep.subr.mxu0 %v843_v35 }
 0x337   :  { %2844 = vmatpush3.msra.mxu0 %v843_v35  ;;  %v980_v35 = vpop.permute.xlu1 %979 }
 0x338   :  { %2845 = vmatprep.subr.mxu0 %v842_v37 }
 0x339   :  { %2846 = vmatpush3.msra.mxu0 %v842_v37 }
 0x33a   :  { %2848 = vmatmul.mubr.msk.f32.vlgmr.msra.gmra.mxu0 %vm389_vm9, %v3422_v38 }
 0x33b   :  { %2878 = vmatprep.mubr.msk.f32.mxu0 %vm389_vm9, %v1134_v56 }
 0x3fa   :  { %v2849_v42 = vpop.f32.mrf.mxu0 }
 0x3fb   :  { %v938_v43 = vadd.f32 %v2849_v42, %v3430_v40  ;;  %v1137_v42 = vld [vmem:[%s3669_s3 + $0x180] sm:$0xff] }
 0x3fc   :  { %v932_v30 = vpop.f32.mrf.mxu0 }
 0x3fd   :  { %v933_v45 = vadd.f32 %v932_v30, %v3432_v41  ;;  %2850 = vmatprep.subr.mxu1 %v938_v43 }
 0x3fe   :  { %2851 = vmatpush3.msra.mxu1 %v938_v43 }
 0x3ff   :  { %2852 = vmatprep.subr.mxu1 %v933_v45 }
 0x400   :  { %2853 = vmatpush3.msra.mxu1 %v933_v45  ;;  %v1345_v45 = vld [vmem:[%s3669_s3 + $0x1c0] sm:$0xff] }
 0x401   :  { %2854 = vmatprep.subr.mxu1 %v3437_v47 }
 0x402   :  { %2855 = vmatpush3.msra.mxu1 %v3437_v47 }
 0x403   :  { %2856 = vmatprep.subr.mxu1 %v3440_v49 }
 0x404   :  { %2857 = vmatpush3.msra.mxu1 %v3440_v49 }
 0x405   :  { %2859 = vmatmul.mubr.msk.f32.vlgmr.msra.gmra.mxu1 %vm389_vm9, %v942_v50  ;;  %v1160_v50 = vpop.permute.xlu0 %1159 }
 0x406   :  { %2861 = vmatprep.mubr.msk.f32.mxu1 %vm389_vm9, %v943_v51  ;;  %v1155_v51 = vpop.permute.xlu1 %1154 }
 0x409   :  { %2862 = vmatmul.mubr.msk.f32.gmra.mxu1 %vm389_vm9, %v944_v7 }
 0x40a   :  { %2864 = vmatprep.mubr.msk.f32.mxu1 %vm389_vm9, %v945_v52  ;;  %v1150_v52 = vpop.permute.xlu0 %1149 }
 0x40d   :  { %2865 = vmatmul.mubr.msk.f32.gmra.mxu1 %vm389_vm9, %v946_v53 }
 0x40e   :  { %2867 = vmatprep.mubr.msk.f32.mxu1 %vm389_vm9, %v947_v54  ;;  %v1145_v54 = vpop.permute.xlu1 %1144 }
 0x411   :  { %2868 = vmatmul.mubr.msk.f32.gmra.mxu1 %vm389_vm9, %v948_v55 }
 0x412   :  { %2903 = vmatprep.mubr.msk.f32.mxu1 %vm389_vm9, %v1344_v57 }
 0x4c5   :  { %v2860_v60 = vpop.f32.mrf.mxu1 }
 0x4c6   :  { %v1093_v3 = vadd.f32 %v2860_v60, %v965_v61 }
 0x4c7   :  { %v1087_v62 = vpop.f32.mrf.mxu1 }
 0x4c8   :  { %v1088_v9 = vadd.f32 %v1087_v62, %v960_v63  ;;  %v1127_v15 = vmax.f32 %v1093_v3, 0.0 }
 0x4c9   :  { %v2863_v0 = vpop.f32.mrf.mxu1 }
 0x4ca   :  { %v1103_v1 = vadd.f32 %v2863_v0, %v975_v58  ;;  %v1126_v23 = vmax.f32 %v1088_v9, 0.0  ;;  %v1365_v0 = vpop.permute.xlu1 %1364 }
 0x4cb   :  { %v1097_v2 = vpop.f32.mrf.mxu1 }
 0x4cc   :  { %v1129_v4 = vmax.f32 %v1103_v1, 0.0  ;;  %v1098_v5 = vadd.f32 %v1097_v2, %v970_v59 }
 0x4cd   :  { %v2866_v8 = vpop.f32.mrf.mxu1 }
 0x4ce   :  { %v1128_v12 = vmax.f32 %v1098_v5, 0.0  ;;  %2870 = vmatprep.subr.mxu0 %v1129_v4  ;;  %v1113_v29 = vadd.f32 %v2866_v8, %v985_v25 }
 0x4cf   :  { %v1107_v14 = vpop.f32.mrf.mxu1  ;;  %2871 = vmatpush3.msra.mxu0 %v1129_v4 }
 0x4d0   :  { %2872 = vmatprep.subr.mxu0 %v1128_v12  ;;  %v1108_v37 = vadd.f32 %v1107_v14, %v980_v35  ;;  %v1131_v43 = vmax.f32 %v1113_v29, 0.0 }
 0x4d1   :  { %v2869_v36 = vpop.f32.mrf.mxu1  ;;  %2873 = vmatpush3.msra.mxu0 %v1128_v12 }
 0x4d2   :  { %v1123_v24 = vadd.f32 %v2869_v36, %v995_v6  ;;  %2874 = vmatprep.subr.mxu0 %v1127_v15  ;;  %v1130_v30 = vmax.f32 %v1108_v37, 0.0  ;;  %v1263_v6 = vld [vmem:[%s3669_s3 + $0x1a8] sm:$0xf] }
 0x4d3   :  { %v1117_v27 = vpop.f32.mrf.mxu1  ;;  %2875 = vmatpush3.msra.mxu0 %v1127_v15  ;;  %v1355_v15 = vpop.permute.xlu1 %1354 }
 0x4d4   :  { %v1133_v31 = vmax.f32 %v1123_v24, 0.0  ;;  %v1118_v33 = vadd.f32 %v1117_v27, %v990_v13  ;;  %2876 = vmatprep.subr.mxu0 %v1126_v23  ;;  %v1473_v27 = vld [vmem:[%s3669_s3 + $0x1f8] sm:$0xf] }
 0x4d5   :  { %2877 = vmatpush3.msra.mxu0 %v1126_v23 }
 0x4d6   :  { %v1132_v39 = vmax.f32 %v1118_v33, 0.0  ;;  %2879 = vmatmul.mubr.msk.f32.vlgmr.msra.gmra.mxu0 %vm389_vm9, %v1135_v28  ;;  %2895 = vmatprep.subr.mxu1 %v1133_v31  ;;  %v1560_v28 = vld [vmem:[%s3669_s3 + $0x210] sm:$0xff] }
 0x4d7   :  { %2896 = vmatpush3.msra.mxu1 %v1133_v31  ;;  %2881 = vmatprep.mubr.msk.f32.mxu0 %vm389_vm9, %v1136_v34 }
 0x4d8   :  { %2897 = vmatprep.subr.mxu1 %v1132_v39  ;;  %2884 = vmatprep.subr.mxu0 %v3079_v10 }
 0x4d9   :  { %2898 = vmatpush3.msra.mxu1 %v1132_v39 }
 0x4da   :  { %2882 = vmatmul.mubr.msk.f32.gmra.mxu0 %vm389_vm9, %v1137_v42  ;;  %2899 = vmatprep.subr.mxu1 %v1131_v43 }
 0x4db   :  { %2900 = vmatpush3.msra.mxu1 %v1131_v43  ;;  %2892 = vmatprep.mubr.msk.f32.mxu0 %vm3080_vm10, %v3079_v10 }
 0x4dc   :  { %2901 = vmatprep.subr.mxu1 %v1130_v30 }
 0x4dd   :  { %2902 = vmatpush3.msra.mxu1 %v1130_v30  ;;  %v1268_v30 = vpop.permute.xlu1 %1267 }
 0x4de   :  { %2904 = vmatmul.mubr.msk.f32.vlgmr.msra.gmra.mxu1 %vm389_vm9, %v1345_v45  ;;  %2920 = vmatprep.subr.mxu1 %v3079_v10 }
 0x4df   :  { %2906 = vmatprep.mubr.msk.f32.mxu1 %vm389_vm9, %v1346_v46  ;;  %2921 = vmatpush3.msra.mxu1 %v3336_v44  ;;  %v1370_v44 = vpop.permute.xlu0 %1369 }
 0x4e0   :  { %2930 = vmatprep.subr.mxu1 %v3079_v10 }
 0x4e2   :  { %2907 = vmatmul.mubr.msk.f32.gmra.mxu1 %vm389_vm9, %v1347_v48 }
 0x4e3   :  { %2922 = vmatprep.mubr.msk.f32.mxu1 %vm3080_vm10, %v3079_v10  ;;  %v1360_v8 = vpop.permute.xlu0 %1359 }
 0x4e6   :  { %2923 = vmatmul.mubr.msk.f32.vlgmr.msra.gmra.mxu1 %vm273_vm0, %v1560_v28 }
 0x4e7   :  { %2932 = vmatprep.mubr.msk.f32.mxu1 %vm3080_vm10, %v3079_v10  ;;  %v1478_v33 = vpop.permute.xlu0 %1477 }
 0x596   :  { %v2880_v7 = vpop.f32.mrf.mxu0 }
 0x597   :  { %v1246_v58 = vadd.f32 %v2880_v7, %v1150_v52 }
 0x598   :  { %v1240_v53 = vpop.f32.mrf.mxu0 }
 0x599   :  { %v1241_v62 = vadd.f32 %v1240_v53, %v1145_v54  ;;  %v1260_v2 = vmax.f32 %v1246_v58, 0.0  ;;  %v1718_v58 = vld [vmem:[%s3669_s3 + $0x220] sm:$0xf] }
 0x59a   :  { %v2883_v55 = vpop.f32.mrf.mxu0 }
 0x59b   :  { %v1256_v56 = vadd.f32 %v2883_v55, %v1160_v50  ;;  %v1259_v4 = vmax.f32 %v1241_v62, 0.0  ;;  %v1714_v55 = vpop.permute.xlu0 %1713 }
 0x59c   :  { %v1250_v57 = vpop.f32.mrf.mxu0 }
 0x59d   :  { %v1262_v59 = vmax.f32 %v1256_v56, 0.0  ;;  %v1251_v60 = vadd.f32 %v1250_v57, %v1155_v51  ;;  %v1559_v51 = vld [vmem:[%s3669_s3 + $0x208] sm:$0xff] }
 0x59e   :  { %v2905_v61 = vpop.f32.mrf.mxu1 }
 0x59f   :  { %v1261_v63 = vmax.f32 %v1251_v60, 0.0  ;;  %2885 = vmatpush3.msra.mxu0 %v1262_v59  ;;  %v1456_v12 = vadd.f32 %v2905_v61, %v1360_v8  ;;  %v1797_v60 = vpop.permute.xlu1 %1796  ;;  %v1973_v8 = vld [vmem:[%s3669_s3 + $0x260] sm:$0xff] }
 0x5a0   :  { %2886 = vmatprep.subr.mxu0 %v3079_v10  ;;  %v1450_v1 = vpop.f32.mrf.mxu1 }
 0x5a1   :  { %2887 = vmatpush3.msra.mxu0 %v1261_v63  ;;  %v1451_v36 = vadd.f32 %v1450_v1, %v1355_v15  ;;  %v1470_v24 = vmax.f32 %v1456_v12, 0.0  ;;  %v2160_v12 = vld [vmem:[%s3669_s3 + $0x2b0] sm:$0xff] }
 0x5a2   :  { %2888 = vmatprep.subr.mxu0 %v3079_v10  ;;  %v2908_v3 = vpop.f32.mrf.mxu1 }
 0x5a3   :  { %v1466_v5 = vadd.f32 %v2908_v3, %v1370_v44  ;;  %2889 = vmatpush3.msra.mxu0 %v1260_v2  ;;  %v1469_v25 = vmax.f32 %v1451_v36, 0.0  ;;  %v1996_v15 = vpop.permute.xlu1 %1995 }
 0x5a4   :  { %2890 = vmatprep.subr.mxu0 %v3079_v10  ;;  %v1460_v9 = vpop.f32.mrf.mxu1 }
 0x5a5   :  { %v1472_v13 = vmax.f32 %v1466_v5, 0.0  ;;  %v1461_v14 = vadd.f32 %v1460_v9, %v1365_v0  ;;  %2891 = vmatpush3.msra.mxu0 %v1259_v4  ;;  %v1974_v9 = vld [vmem:[%s3669_s3 + $0x268] sm:$0xff] }
 0x5a6   :  { %2893 = vmatmul.mubr.msk.f32.vlgmr.msra.gmra.mxu0 %vm389_vm9, %v1263_v6  ;;  %2909 = vmatprep.subr.mxu0 %v3079_v10  ;;  %v1630_v7 = vpop.f32.mrf.mxu1 }
 0x5a7   :  { %v1471_v23 = vmax.f32 %v1461_v14, 0.0  ;;  %2910 = vmatpush3.msra.mxu0 %v1472_v13  ;;  %2917 = vmatprep.mubr.msk.f32.mxu0 %vm3080_vm10, %v3079_v10  ;;  %v2370_v13 = vld [vmem:[%s3669_s3 + $0x300] sm:$0xff]  ;;  %v2001_v14 = vpop.permute.xlu0 %2000 }
 0x5a8   :  { %2911 = vmatprep.subr.mxu0 %v3079_v10  ;;  %v2924_v52 = vpop.f32.mrf.mxu1 }
 0x5a9   :  { %2912 = vmatpush3.msra.mxu0 %v1471_v23  ;;  %v2161_v52 = vld [vmem:[%s3669_s3 + $0x2b8] sm:$0xff] }
 0x5aa   :  { %2913 = vmatprep.subr.mxu0 %v3079_v10 }
 0x5ab   :  { %2914 = vmatpush3.msra.mxu0 %v1470_v24  ;;  %v1991_v23 = vpop.permute.xlu0 %1990 }
 0x5ac   :  { %2915 = vmatprep.subr.mxu0 %v3079_v10 }
 0x5ad   :  { %2916 = vmatpush3.msra.mxu0 %v1469_v25  ;;  %v1986_v25 = vpop.permute.xlu1 %1985 }
 0x5ae   :  { %2918 = vmatmul.mubr.msk.f32.vlgmr.msra.gmra.mxu0 %vm389_vm9, %v1473_v27  ;;  %2925 = vmatprep.subr.mxu0 %v3079_v10 }
 0x5af   :  { %2927 = vmatprep.mubr.msk.f32.mxu0 %vm3080_vm10, %v3079_v10 }
 0x666   :  { %v1339_v29 = vpop.f32.mrf.mxu0 }
 0x667   :  { %v1340_v45 = vadd.f32 %v1339_v29, %v1268_v30 }
 0x668   :  { %v2894_v31 = vpop.f32.mrf.mxu0 }
 0x669   :  { %v1343_v46 = vsub.f32 %v3373_v16, %v1340_v45 }
 0x66e   :  { %v1549_v34 = vpop.f32.mrf.mxu0 }
 0x66f   :  { %v1550_v35 = vadd.f32 %v1549_v34, %v1478_v33 }
 0x670   :  { %v2919_v37 = vpop.f32.mrf.mxu0 }
 0x671   :  { %v2645_v39 = vclamps-f32 %v1550_v35, 2.0  ;;  %v2021_v35 = vpop.permute.xlu0 %2020 }
 0x673   :  { %v1555_v42 = vsub.f32 0.0, %v2645_v39 }
 0x675   :  { %v1556_v43 = vmul.f32 1.442695, %v1555_v42 }
 0x677   :  { %3046 = vpow2.f32 %v1556_v43  ;;  %v2016_v43 = vpop.permute.xlu1 %2015 }
 0x684   :  { %v3047_v48 = vpop.eup %3046 }
 0x685   :  { %v1558_v50 = vmul.f32 %v3047_v48, %v1343_v46 }
 0x687   :  { %2926 = vmatpush3.msk.msra.mxu0 %vm550_vm1, %v1558_v50 }
 0x688   :  { %2928 = vmatmul.mubr.msk.f32.vlgmr.msra.gmra.mxu0 %vm546_vm6, %v1559_v51  ;;  %v2011_v51 = vpop.permute.xlu0 %2010 }
 0x689   :  { %2937 = vmatprep.mubr.msk.f32.mxu0 %vm546_vm6, %v3369_v11 }
 0x748   :  { %v1706_v53 = vpop.f32.mrf.mxu0 }
 0x749   :  { %v1707_v54 = vadd.f32 %v1706_v53, %v1630_v7 }
 0x74a   :  { %v2929_v56 = vpop.f32.mrf.mxu0 }
 0x74b   :  { %v1716_v16 = vadd.f32 %v1714_v55, %v1707_v54  ;;  %v2162_v56 = vld [vmem:[%s3669_s3 + $0x2c0] sm:$0xff] }
 0x74d   :  { %v1717_v57 = vmax.f32 %v1716_v16, 0.0  ;;  %v2006_v16 = vpop.permute.xlu1 %2005 }
 0x74f   :  { %2931 = vmatpush3.msra.mxu1 %v1717_v57 }
 0x750   :  { %2933 = vmatmul.mubr.msk.f32.vlgmr.msra.gmra.mxu1 %vm273_vm0, %v1718_v58 }
 0x751   :  { %2951 = vmatprep.mubr.msk.f32.mxu1 %vm389_vm9, %v3403_v20 }
 0x810   :  { %v1788_v59 = vpop.f32.mrf.mxu1 }
 0x811   :  { %v1792_v11 = vadd.f32 %v1788_v59, %v1558_v50  ;;  %v2163_v59 = vld [vmem:[%s3669_s3 + $0x2c8] sm:$0xff] }
 0x812   :  { %v2934_v44 = vpop.f32.mrf.mxu1 }
 0x813   :  { %v3554_v61 = vadd.f32 %v1797_v60, %v1792_v11  ;;  %v2371_v44 = vld [vmem:[%s3669_s3 + $0x308] sm:$0xff] }
 0x815   :  { %2935 = vmatprep.subr.msk.mxu0 %vm550_vm1, %v3554_v61 }
 0x816   :  { %2936 = vmatpush3.msk.msra.mxu0 %vm550_vm1, %v3554_v61 }
 0x817   :  { %2938 = vmatmul.mubr.msk.f32.vlgmr.msra.gmra.mxu0 %vm546_vm6, %v3378_v17 }
 0x818   :  { %2940 = vmatprep.mubr.msk.f32.mxu0 %vm546_vm6, %v3385_v18 }
 0x81b   :  { %2941 = vmatmul.mubr.msk.f32.gmra.mxu0 %vm546_vm6, %v3396_v19 }
 0x8d7   :  { %v2939_v20 = vpop.f32.mrf.mxu0 }
 0x8d8   :  { %v1875_v2 = vadd.f32 %v2939_v20, %v3412_v26  ;;  %v2372_v20 = vld [vmem:[%s3669_s3 + $0x310] sm:$0xff] }
 0x8d9   :  { %v1869_v62 = vpop.f32.mrf.mxu0 }
 0x8da   :  { %v1870_v5 = vadd.f32 %v1869_v62, %v3416_v32  ;;  %v1889_v18 = vmax.f32 %v1875_v2, 0.0  ;;  %v2373_v62 = vld [vmem:[%s3669_s3 + $0x318] sm:$0xff] }
 0x8db   :  { %v2942_v63 = vpop.f32.mrf.mxu0 }
 0x8dc   :  { %v1885_v0 = vadd.f32 %v2942_v63, %v3407_v21  ;;  %v1888_v19 = vmax.f32 %v1870_v5, 0.0  ;;  %v1967_v21 = vld [vmem:[%s3669_s3 + $0x230] sm:$0xff]  ;;  %v2186_v63 = vpop.permute.xlu0 %2185 }
 0x8dd   :  { %v1879_v1 = vpop.f32.mrf.mxu0  ;;  %2962 = vmatprep.mubr.msk.f32.mxu0 %vm389_vm9, %v1967_v21 }
 0x8de   :  { %v1891_v3 = vmax.f32 %v1885_v0, 0.0  ;;  %v1880_v4 = vadd.f32 %v1879_v1, %v3409_v22  ;;  %v2181_v0 = vpop.permute.xlu1 %2180 }
 0x8e0   :  { %v1890_v17 = vmax.f32 %v1880_v4, 0.0  ;;  %2943 = vmatprep.subr.mxu1 %v1891_v3  ;;  %v2176_v2 = vpop.permute.xlu0 %2175 }
 0x8e1   :  { %2944 = vmatpush3.msra.mxu1 %v1891_v3 }
 0x8e2   :  { %2945 = vmatprep.subr.mxu1 %v1890_v17  ;;  %v2171_v4 = vpop.permute.xlu1 %2170 }
 0x8e3   :  { %2946 = vmatpush3.msra.mxu1 %v1890_v17 }
 0x8e4   :  { %2947 = vmatprep.subr.mxu1 %v1889_v18 }
 0x8e5   :  { %2948 = vmatpush3.msra.mxu1 %v1889_v18 }
 0x8e6   :  { %2949 = vmatprep.subr.mxu1 %v1888_v19 }
 0x8e7   :  { %2950 = vmatpush3.msra.mxu1 %v1888_v19 }
 0x8e8   :  { %2952 = vmatmul.mubr.msk.f32.vlgmr.msra.gmra.mxu1 %vm389_vm9, %v3422_v38  ;;  %v1968_v38 = vld [vmem:[%s3669_s3 + $0x238] sm:$0xff] }
 0x8e9   :  { %2982 = vmatprep.mubr.msk.f32.mxu1 %vm389_vm9, %v2160_v12  ;;  %v2289_v12 = vld [vmem:[%s3669_s3 + $0x2f0] sm:$0xf] }
 0x9a8   :  { %v2953_v22 = vpop.f32.mrf.mxu1 }
 0x9a9   :  { %v1964_v26 = vadd.f32 %v2953_v22, %v3430_v40  ;;  %v1969_v40 = vld [vmem:[%s3669_s3 + $0x240] sm:$0xff] }
 0x9aa   :  { %v1958_v32 = vpop.f32.mrf.mxu1 }
 0x9ab   :  { %v1959_v6 = vadd.f32 %v1958_v32, %v3432_v41  ;;  %2954 = vmatprep.subr.mxu0 %v1964_v26  ;;  %v1970_v41 = vld [vmem:[%s3669_s3 + $0x248] sm:$0xff] }
 0x9ac   :  { %2955 = vmatpush3.msra.mxu0 %v1964_v26  ;;  %v2396_v26 = vpop.permute.xlu0 %2395 }
 0x9ad   :  { %2956 = vmatprep.subr.mxu0 %v1959_v6 }
 0x9ae   :  { %2957 = vmatpush3.msra.mxu0 %v1959_v6 }
 0x9af   :  { %2958 = vmatprep.subr.mxu0 %v3437_v47 }
 0x9b0   :  { %2959 = vmatpush3.msra.mxu0 %v3437_v47  ;;  %v1971_v47 = vld [vmem:[%s3669_s3 + $0x250] sm:$0xff] }
 0x9b1   :  { %2960 = vmatprep.subr.mxu0 %v3440_v49 }
 0x9b2   :  { %2961 = vmatpush3.msra.mxu0 %v3440_v49  ;;  %v1972_v49 = vld [vmem:[%s3669_s3 + $0x258] sm:$0xff] }
 0x9b3   :  { %2963 = vmatmul.mubr.msk.f32.vlgmr.msra.gmra.mxu0 %vm389_vm9, %v1968_v38 }
 0x9b4   :  { %2965 = vmatprep.mubr.msk.f32.mxu0 %vm389_vm9, %v1969_v40  ;;  %v2391_v40 = vpop.permute.xlu1 %2390 }
 0x9b7   :  { %2966 = vmatmul.mubr.msk.f32.gmra.mxu0 %vm389_vm9, %v1970_v41 }
 0x9b8   :  { %2968 = vmatprep.mubr.msk.f32.mxu0 %vm389_vm9, %v1971_v47 }
 0x9bb   :  { %2969 = vmatmul.mubr.msk.f32.gmra.mxu0 %vm389_vm9, %v1972_v49 }
 0x9bc   :  { %2971 = vmatprep.mubr.msk.f32.mxu0 %vm389_vm9, %v1973_v8 }
 0x9bf   :  { %2972 = vmatmul.mubr.msk.f32.gmra.mxu0 %vm389_vm9, %v1974_v9 }
 0x9c0   :  { %3007 = vmatprep.mubr.msk.f32.mxu0 %vm389_vm9, %v2370_v13  ;;  %v2386_v13 = vpop.permute.xlu0 %2385 }
 0xa73   :  { %v2964_v36 = vpop.f32.mrf.mxu0 }
 0xa74   :  { %v2119_v31 = vadd.f32 %v2964_v36, %v1991_v23 }
 0xa75   :  { %v2113_v24 = vpop.f32.mrf.mxu0 }
 0xa76   :  { %v2114_v39 = vadd.f32 %v2113_v24, %v1986_v25  ;;  %v2153_v45 = vmax.f32 %v2119_v31, 0.0  ;;  %v2381_v24 = vpop.permute.xlu1 %2380  ;;  %v2499_v31 = vld [vmem:[%s3669_s3 + $0x340] sm:$0xf]  ;;  %s3050_s3 = scalar_lea.vmem %s2593_s7, 64 }
 0xa77   :  { %v2967_v27 = vpop.f32.mrf.mxu0  ;;  %p3051_p0 = scmp.ne.s32.totalorder %s2593_s7, %s3050_s3  ;;  %p3056_p2 = scmp.lt.s32.totalorder %s3050_s3, %s3050_s3 }
 0xa78   :  { %v2129_v28 = vadd.f32 %v2967_v27, %v2001_v14  ;;  %v2152_v48 = vmax.f32 %v2114_v39, 0.0 }
 0xa79   :  { %v2123_v29 = vpop.f32.mrf.mxu0  ;;  %p3057_p3 = por %p3056_p2, %p3055_p1 }
 0xa7a   :  { %v2155_v33 = vmax.f32 %v2129_v28, 0.0  ;;  %v2124_v34 = vadd.f32 %v2123_v29, %v1996_v15 }
 0xa7b   :  { %v2970_v37 = vpop.f32.mrf.mxu0  ;;  %p3058_p4 = pnand %p3057_p3, %p3051_p0 }
 0xa7c   :  { %v2154_v42 = vmax.f32 %v2124_v34, 0.0  ;;  %2974 = vmatprep.subr.mxu1 %v2155_v33  ;;  %v2139_v53 = vadd.f32 %v2970_v37, %v2011_v51 }
 0xa7d   :  { %v2133_v30 = vpop.f32.mrf.mxu0  ;;  %2975 = vmatpush3.msra.mxu1 %v2155_v33 }
 0xa7e   :  { %2976 = vmatprep.subr.mxu1 %v2154_v42  ;;  %v2134_v57 = vadd.f32 %v2133_v30, %v2006_v16  ;;  %v2157_v11 = vmax.f32 %v2139_v53, 0.0 }
 0xa7f   :  { %v2973_v46 = vpop.f32.mrf.mxu0  ;;  %2977 = vmatpush3.msra.mxu1 %v2154_v42 }
 0xa80   :  { %v2149_v50 = vadd.f32 %v2973_v46, %v2021_v35  ;;  %2978 = vmatprep.subr.mxu1 %v2153_v45  ;;  %v2156_v60 = vmax.f32 %v2134_v57, 0.0  ;;  %v2504_v35 = vpop.permute.xlu0 %2503  ;;  %v2294_v46 = vpop.permute.xlu1 %2293 }
 0xa81   :  { %v2143_v7 = vpop.f32.mrf.mxu0  ;;  %2979 = vmatpush3.msra.mxu1 %v2153_v45 }
 0xa82   :  { %v2159_v54 = vmax.f32 %v2149_v50, 0.0  ;;  %v2144_v55 = vadd.f32 %v2143_v7, %v2016_v43  ;;  %2980 = vmatprep.subr.mxu1 %v2152_v48 }
 0xa83   :  { %2981 = vmatpush3.msra.mxu1 %v2152_v48 }
 0xa84   :  { %v2158_v58 = vmax.f32 %v2144_v55, 0.0  ;;  %2983 = vmatmul.mubr.msk.f32.vlgmr.msra.gmra.mxu1 %vm389_vm9, %v2161_v52  ;;  %2999 = vmatprep.subr.mxu0 %v2159_v54 }
 0xa85   :  { %3000 = vmatpush3.msra.mxu0 %v2159_v54  ;;  %2985 = vmatprep.mubr.msk.f32.mxu1 %vm389_vm9, %v2162_v56 }
 0xa86   :  { %3001 = vmatprep.subr.mxu0 %v2158_v58  ;;  %2988 = vmatprep.subr.mxu1 %v3079_v10 }
 0xa87   :  { %3002 = vmatpush3.msra.mxu0 %v2158_v58 }
 0xa88   :  { %2986 = vmatmul.mubr.msk.f32.gmra.mxu1 %vm389_vm9, %v2163_v59  ;;  %3003 = vmatprep.subr.mxu0 %v2157_v11 }
 0xa89   :  { %3004 = vmatpush3.msra.mxu0 %v2157_v11  ;;  %2996 = vmatprep.mubr.msk.f32.mxu1 %vm3080_vm10, %v3079_v10 }
 0xa8a   :  { %3005 = vmatprep.subr.mxu0 %v2156_v60 }
 0xa8b   :  { %3006 = vmatpush3.msra.mxu0 %v2156_v60 }
 0xa8c   :  { %3008 = vmatmul.mubr.msk.f32.vlgmr.msra.gmra.mxu0 %vm389_vm9, %v2371_v44 }
 0xa8d   :  { %3010 = vmatprep.mubr.msk.f32.mxu0 %vm389_vm9, %v2372_v20 }
 0xa90   :  { %3011 = vmatmul.mubr.msk.f32.gmra.mxu0 %vm389_vm9, %v2373_v62 }
 0xb44   :  { %v2984_v1 = vpop.f32.mrf.mxu1 }
 0xb45   :  { %v2272_v19 = vadd.f32 %v2984_v1, %v2176_v2 }
 0xb46   :  { %v2266_v3 = vpop.f32.mrf.mxu1 }
 0xb47   :  { %v2267_v6 = vadd.f32 %v2266_v3, %v2171_v4  ;;  %v2286_v47 = vmax.f32 %v2272_v19, 0.0 }
 0xb48   :  { %v2987_v5 = vpop.f32.mrf.mxu1 }
 0xb49   :  { %v2282_v17 = vadd.f32 %v2987_v5, %v2186_v63  ;;  %v2285_v8 = vmax.f32 %v2267_v6, 0.0 }
 0xb4a   :  { %v2276_v18 = vpop.f32.mrf.mxu1 }
 0xb4b   :  { %v2288_v21 = vmax.f32 %v2282_v17, 0.0  ;;  %v2277_v22 = vadd.f32 %v2276_v18, %v2181_v0 }
 0xb4c   :  { %v3009_v32 = vpop.f32.mrf.mxu0 }
 0xb4d   :  { %v2287_v38 = vmax.f32 %v2277_v22, 0.0  ;;  %2989 = vmatpush3.msra.mxu1 %v2288_v21  ;;  %v2482_v15 = vadd.f32 %v3009_v32, %v2386_v13 }
 0xb4e   :  { %2990 = vmatprep.subr.mxu1 %v3079_v10  ;;  %v2476_v41 = vpop.f32.mrf.mxu0 }
 0xb4f   :  { %2991 = vmatpush3.msra.mxu1 %v2287_v38  ;;  %v2477_v25 = vadd.f32 %v2476_v41, %v2381_v24  ;;  %v2496_v28 = vmax.f32 %v2482_v15, 0.0 }
 0xb50   :  { %2992 = vmatprep.subr.mxu1 %v3079_v10  ;;  %v3012_v49 = vpop.f32.mrf.mxu0 }
 0xb51   :  { %v2492_v9 = vadd.f32 %v3012_v49, %v2396_v26  ;;  %2993 = vmatpush3.msra.mxu1 %v2286_v47  ;;  %v2495_v29 = vmax.f32 %v2477_v25, 0.0 }
 0xb52   :  { %2994 = vmatprep.subr.mxu1 %v3079_v10  ;;  %v2486_v14 = vpop.f32.mrf.mxu0 }
 0xb53   :  { %v2498_v36 = vmax.f32 %v2492_v9, 0.0  ;;  %v2487_v23 = vadd.f32 %v2486_v14, %v2391_v40  ;;  %2995 = vmatpush3.msra.mxu1 %v2285_v8 }
 0xb54   :  { %2997 = vmatmul.mubr.msk.f32.vlgmr.msra.gmra.mxu1 %vm389_vm9, %v2289_v12  ;;  %3013 = vmatprep.subr.mxu1 %v3079_v10 }
 0xb55   :  { %v2497_v27 = vmax.f32 %v2487_v23, 0.0  ;;  %3014 = vmatpush3.msra.mxu1 %v2498_v36  ;;  %3021 = vmatprep.mubr.msk.f32.mxu1 %vm3080_vm10, %v3079_v10 }
 0xb56   :  { %3015 = vmatprep.subr.mxu1 %v3079_v10 }
 0xb57   :  { %3016 = vmatpush3.msra.mxu1 %v2497_v27 }
 0xb58   :  { %3017 = vmatprep.subr.mxu1 %v3079_v10 }
 0xb59   :  { %3018 = vmatpush3.msra.mxu1 %v2496_v28 }
 0xb5a   :  { %3019 = vmatprep.subr.mxu1 %v3079_v10 }
 0xb5b   :  { %3020 = vmatpush3.msra.mxu1 %v2495_v29 }
 0xb5c   :  { %3022 = vmatmul.mubr.msk.f32.vlgmr.msra.gmra.mxu1 %vm389_vm9, %v2499_v31 }
 0xc14   :  { %v2365_v33 = vpop.f32.mrf.mxu1 }
 0xc15   :  { %v2366_v48 = vadd.f32 %v2365_v33, %v2294_v46 }
 0xc16   :  { %v2998_v34 = vpop.f32.mrf.mxu1 }
 0xc17   :  { %v2369_v50 = vsub.f32 %v3554_v61, %v2366_v48 }
 0xc1c   :  { %v2575_v37 = vpop.f32.mrf.mxu1 }
 0xc1d   :  { %v2576_v39 = vadd.f32 %v2575_v37, %v2504_v35 }
 0xc1e   :  { %v3023_v42 = vpop.f32.mrf.mxu1 }
 0xc1f   :  { %v2675_v43 = vclamps-f32 %v2576_v39, 2.0 }
 0xc21   :  { %v2581_v30 = vsub.f32 0.0, %v2675_v43 }
 0xc23   :  { %v2582_v45 = vmul.f32 1.442695, %v2581_v30 }
 0xc25   :  { %3048 = vpow2.f32 %v2582_v45 }
 0xc32   :  { %v3049_v10 = vpop.eup %3048 }
 0xc33   :  { %v2584_v51 = vmul.f32 %v3049_v10, %v2369_v50 }
 0xc35   :  { %2585 = vst [vmem:[#allocation2] sm:$0xf] %v2584_v51 }
 0xc36   :  { %3061 = shalt.err (!%p3058_p4)
}
 0xc37   :  { %2595 = dma.vmem_to_hbm [thread:$0]  %s2593_s7, 64, %s3670_s4, [#allocation3]  }
 0xc38   :  { %3070 = dma.done.wait [#allocation3], 64  }
 0xc39   :  { %3071 = vsyncadd [#allocation3], 4294967232 }
 0xc3a   :  { %2599 = vsyncpa [#allocation3], 1 }

</bundles_post_ra>
